<compile_context>
chip_gen: v7x
topology: tpu7x:2x2x1
jax: 0.10.0
libtpu: 0.0.40
codegen_flags: <defaults>
</compile_context>

<pallas_src>
import functools

import jax
import jax.numpy as jnp
from jax.experimental import pallas as pl
from jax.experimental.pallas import tpu as pltpu


def _fused_mhsa_kernel(q_ref, k_ref, v_ref, emb_ref, o_ref, *, scale):
    """One grid step: full attention for a group of (batch*head) slices.

    q_ref, k_ref : (G, I, Dqk)   emb_ref : (I, Dqk)
    v_ref, o_ref : (G, I, Dv)
    """
    q = q_ref[...] * scale                       # scale applied exactly once, as in MHSA
    # logits = q@k^T + q@emb^T == q@(k+emb)^T  -> fold the positional bias
    # into the keys; the (G, I, I) logits never leave VMEM.
    k_eff = k_ref[...] + emb_ref[...][None, :, :]
    s = jnp.einsum('gid,gjd->gij', q, k_eff,
                   preferred_element_type=jnp.float32)
    # Full-row softmax (I = H*W keys fit comfortably in VMEM for BoTNet fmaps).
    m = jnp.max(s, axis=-1, keepdims=True)
    p = jnp.exp(s - m)
    l = jnp.sum(p, axis=-1, keepdims=True)
    w = p * pl.reciprocal(l, approx=False)       # approx=True is fine in production
    o = jnp.einsum('gij,gjd->gid', w.astype(v_ref.dtype), v_ref[...],
                   preferred_element_type=jnp.float32)
    o_ref[...] = o.astype(o_ref.dtype)


def _pick_group(bh, seq, d_qk, d_v, itemsize, vmem_budget_bytes=8 << 20):
    """Group size along batch*heads: a divisor of bh that fits a conservative
    VMEM budget and (when possible) yields >= 2 grid steps so the 'parallel'
    axis shards across v7x's two TensorCores (no-op on v5e/v6e)."""
    per_g = 2 * seq * (2 * d_qk + 2 * d_v) * itemsize + seq * seq * 4
    cap = max(1, min(bh, vmem_budget_bytes // max(per_g, 1)))
    if bh >= 2:
        cap = min(cap, max(1, bh // 2))
    for g in range(cap, 0, -1):
        if bh % g == 0:
            return g
    return 1


def fused_mhsa_attention(q, k, v, height_param, width_param, *, scale):
    """q, k: (B, heads, I, Dqk); v: (B, heads, I, Dv); height: (H, Dqk);
    width: (W, Dqk) with H*W == I.  Returns (B, heads, I, Dv)."""
    B, NH, I, Dqk = q.shape
    Dv = v.shape[-1]
    H = height_param.shape[0]
    W = width_param.shape[0]
    assert H * W == I, f"fmap {H}x{W} must match sequence length {I}"

    # Hoisted, one-time emb construction (I, Dqk), same dtype as the keys.
    emb = (height_param[:, None, :] + width_param[None, :, :]
           ).reshape(I, Dqk).astype(k.dtype)

    BH = B * NH
    qf = q.reshape(BH, I, Dqk)     # free reshapes (contiguous), no pad/slice
    kf = k.reshape(BH, I, Dqk)
    vf = v.reshape(BH, I, Dv)

    G = _pick_group(BH, I, Dqk, Dv, jnp.dtype(q.dtype).itemsize)
    grid = (BH // G,)

    kernel = functools.partial(_fused_mhsa_kernel, scale=scale)
    out = pl.pallas_call(
        kernel,
        out_shape=jax.ShapeDtypeStruct((BH, I, Dv), q.dtype),
        grid_spec=pltpu.PrefetchScalarGridSpec(
            num_scalar_prefetch=0,
            grid=grid,
            in_specs=[
                pl.BlockSpec((G, I, Dqk), lambda g: (g, 0, 0)),   # q groups
                pl.BlockSpec((G, I, Dqk), lambda g: (g, 0, 0)),   # k groups
                pl.BlockSpec((G, I, Dv), lambda g: (g, 0, 0)),    # v groups
                pl.BlockSpec((I, Dqk), lambda g: (0, 0)),         # emb (tiny, grid-invariant)
            ],
            out_specs=pl.BlockSpec((G, I, Dv), lambda g: (g, 0, 0)),
        ),
        compiler_params=pltpu.CompilerParams(
            dimension_semantics=("parallel",),
        ),
    )(qf, kf, vf, emb)
    return out.reshape(B, NH, I, Dv)


def _project_qkv(fmap, w_qk, w_v, *, heads, dim_qk, dim_v):
    """MHSA's 1x1-conv q/k/v projections (plain XLA) + head split."""
    B, C, H, W = fmap.shape
    I = H * W
    x = fmap.reshape(B, C, I)
    qk = jnp.einsum('oc,bci->boi', w_qk, x, precision=jax.lax.Precision.HIGHEST)
    v = jnp.einsum('oc,bci->boi', w_v, x, precision=jax.lax.Precision.HIGHEST)
    q, k = jnp.split(qk, 2, axis=1)

    def heads_last(t, d):
        # 'B (h d) (H W) -> B h (H W) d'
        return t.reshape(B, heads, d, I).transpose(0, 1, 3, 2)

    return heads_last(q, dim_qk), heads_last(k, dim_qk), heads_last(v, dim_v)


def mhsa_forward(fmap, w_qk, w_v, height_param, width_param, *, heads, dim_qk, dim_v):
    """Full MHSA forward: projections (XLA) + fused attention kernel.
    fmap: (B, C, H, W) -> (B, heads*dim_v, H, W)."""
    B, C, H, W = fmap.shape
    q, k, v = _project_qkv(fmap, w_qk, w_v, heads=heads, dim_qk=dim_qk, dim_v=dim_v)
    attn = fused_mhsa_attention(q, k, v, height_param, width_param,
                                scale=dim_qk ** (-0.5))
    # 'B h (H W) d -> B (h d) H W'
    return attn.transpose(0, 1, 3, 2).reshape(B, heads * dim_v, H, W)


def reference_mhsa(fmap, w_qk, w_v, height_param, width_param, *, heads, dim_qk, dim_v):
    """Pure-JAX (unfused) reference matching the PyTorch MHSA + AbsPosEmb."""
    B, C, H, W = fmap.shape
    I = H * W
    q, k, v = _project_qkv(fmap, w_qk, w_v, heads=heads, dim_qk=dim_qk, dim_v=dim_v)
    q = q * (dim_qk ** (-0.5))
    hi = jax.lax.Precision.HIGHEST
    logits = jnp.einsum('bhxd,bhyd->bhxy', q, k, precision=hi)
    emb = (height_param[:, None, :] + width_param[None, :, :]).reshape(I, dim_qk)
    logits = logits + jnp.einsum('bhid,jd->bhij', q, emb, precision=hi)
    weights = jax.nn.softmax(logits, axis=-1)
    attn = jnp.einsum('bhxy,bhyd->bhxd', weights, v, precision=hi)
    return attn.transpose(0, 1, 3, 2).reshape(B, heads * dim_v, H, W)


if __name__ == "__main__":
    # Small shapes consistent with the module: bottleneck featuremap with
    # C=8 channels on an 8x8 fmap (I = 64), heads=4, module-default
    # dim_qk = dim_v = 128 (lane-dense output).
    B, C, H, W = 2, 8, 8, 8
    heads, dim_qk, dim_v = 4, 128, 128

    key = jax.random.PRNGKey(0)
    k_x, k_qk, k_v, k_h, k_w = jax.random.split(key, 5)
    fmap = jax.random.normal(k_x, (B, C, H, W), dtype=jnp.float32)
    w_qk = jax.random.normal(k_qk, (2 * heads * dim_qk, C), dtype=jnp.float32) / (C ** 0.5)
    w_v = jax.random.normal(k_v, (heads * dim_v, C), dtype=jnp.float32) / (C ** 0.5)
    pos_scale = dim_qk ** (-0.5)
    height_param = jax.random.normal(k_h, (H, dim_qk), dtype=jnp.float32) * pos_scale
    width_param = jax.random.normal(k_w, (W, dim_qk), dtype=jnp.float32) * pos_scale

    out = mhsa_forward(fmap, w_qk, w_v, height_param, width_param,
                       heads=heads, dim_qk=dim_qk, dim_v=dim_v)
    jax.block_until_ready(out)

    ref = reference_mhsa(fmap, w_qk, w_v, height_param, width_param,
                         heads=heads, dim_qk=dim_qk, dim_v=dim_v)
    assert out.shape == (B, heads * dim_v, H, W)
    max_err = jnp.max(jnp.abs(out - ref))
    assert jnp.allclose(out, ref, atol=2e-2, rtol=2e-2), f"max abs err {max_err}"

    print("KERNEL_OK")
</pallas_src>

<mosaic_0001>
module attributes {stable_mosaic.version = 11 : i64} {
  func.func @_fused_mhsa_kernel(%arg0: i32, %arg1: memref<4x64x128xf32, #tpu.memory_space<vmem>>, %arg2: memref<4x64x128xf32, #tpu.memory_space<vmem>>, %arg3: memref<4x64x128xf32, #tpu.memory_space<vmem>>, %arg4: memref<64x128xf32, #tpu.memory_space<vmem>>, %arg5: memref<4x64x128xf32, #tpu.memory_space<vmem>>) attributes {dimension_semantics = [#tpu.dimension_semantics<parallel>], iteration_bounds = array<i64: 2>, scalar_prefetch = 0 : i64, scratch_operands = 0 : i64, tpu.core_type = #tpu.core_type<tc>, window_params = [{transform_indices = @transform_0, window_bounds = array<i64: 4, 64, 128>}, {transform_indices = @transform_1, window_bounds = array<i64: 4, 64, 128>}, {transform_indices = @transform_2, window_bounds = array<i64: 4, 64, 128>}, {pipeline_mode = #tpu.pipeline_mode<synchronous>, transform_indices = @transform_3, window_bounds = array<i64: 64, 128>}, {transform_indices = @transform_4, window_bounds = array<i64: 4, 64, 128>}]} {
    %c0 = arith.constant 0 : index
    %c0_0 = arith.constant 0 : index
    %c0_1 = arith.constant 0 : index
    %0 = vector.load %arg1[%c0, %c0_0, %c0_1] : memref<4x64x128xf32, #tpu.memory_space<vmem>>, vector<4x64x128xf32>
    %cst = arith.constant 0.0883883461 : f32
    %1 = vector.broadcast %cst : f32 to vector<4x64x128xf32>
    %2 = arith.mulf %0, %1 : vector<4x64x128xf32>
    %c0_2 = arith.constant 0 : index
    %c0_3 = arith.constant 0 : index
    %c0_4 = arith.constant 0 : index
    %3 = vector.load %arg2[%c0_2, %c0_3, %c0_4] : memref<4x64x128xf32, #tpu.memory_space<vmem>>, vector<4x64x128xf32>
    %c0_5 = arith.constant 0 : index
    %c0_6 = arith.constant 0 : index
    %4 = vector.load %arg4[%c0_5, %c0_6] : memref<64x128xf32, #tpu.memory_space<vmem>>, vector<64x128xf32>
    %5 = vector.shape_cast %4 : vector<64x128xf32> to vector<1x64x128xf32>
    %6 = vector.broadcast %5 : vector<1x64x128xf32> to vector<4x64x128xf32>
    %7 = arith.addf %3, %6 : vector<4x64x128xf32>
    "tpu.trace_start"() <{level = 10 : i32, message = "gid,gjd->gij"}> : () -> ()
    %cst_7 = arith.constant dense<0.000000e+00> : vector<4x64x64xf32>
    %8 = tpu.matmul %2, %7, %cst_7 {dimension_numbers = #tpu.dot_dimension_numbers<[2], [2], [1], [1], [0, 0, 0, 1, 1, 1], [0], [0]>} : vector<4x64x128xf32>, vector<4x64x128xf32>, vector<4x64x64xf32> -> vector<4x64x64xf32>
    "tpu.trace_stop"() : () -> ()
    %cst_8 = arith.constant dense<0xFF800000> : vector<4x64xf32>
    %9 = vector.multi_reduction <maximumf>, %8, %cst_8 [2] : vector<4x64x64xf32> to vector<4x64xf32>
    %10 = vector.shape_cast %9 : vector<4x64xf32> to vector<4x64x1xf32>
    %11 = vector.broadcast %10 : vector<4x64x1xf32> to vector<4x64x64xf32>
    %12 = arith.subf %8, %11 : vector<4x64x64xf32>
    %13 = math.exp %12 : vector<4x64x64xf32>
    %cst_9 = arith.constant dense<0.000000e+00> : vector<4x64xf32>
    %14 = vector.multi_reduction <add>, %13, %cst_9 [2] : vector<4x64x64xf32> to vector<4x64xf32>
    %15 = vector.shape_cast %14 : vector<4x64xf32> to vector<4x64x1xf32>
    %16 = tpu.reciprocal %15 : vector<4x64x1xf32> -> vector<4x64x1xf32>
    %17 = vector.broadcast %16 : vector<4x64x1xf32> to vector<4x64x64xf32>
    %18 = arith.mulf %13, %17 : vector<4x64x64xf32>
    %c0_10 = arith.constant 0 : index
    %c0_11 = arith.constant 0 : index
    %c0_12 = arith.constant 0 : index
    %19 = vector.load %arg3[%c0_10, %c0_11, %c0_12] : memref<4x64x128xf32, #tpu.memory_space<vmem>>, vector<4x64x128xf32>
    "tpu.trace_start"() <{level = 10 : i32, message = "gij,gjd->gid"}> : () -> ()
    %cst_13 = arith.constant dense<0.000000e+00> : vector<4x64x128xf32>
    %20 = tpu.matmul %18, %19, %cst_13 {dimension_numbers = #tpu.dot_dimension_numbers<[2], [1], [1], [2], [0, 0, 0, 1, 1, 2], [0], [0]>} : vector<4x64x64xf32>, vector<4x64x128xf32>, vector<4x64x128xf32> -> vector<4x64x128xf32>
    "tpu.trace_stop"() : () -> ()
    %c0_14 = arith.constant 0 : index
    %c0_15 = arith.constant 0 : index
    %c0_16 = arith.constant 0 : index
    %21 = vector.load %arg5[%c0_14, %c0_15, %c0_16] : memref<4x64x128xf32, #tpu.memory_space<vmem>>, vector<4x64x128xf32>
    tpu.vector_store %arg5[%c0_14, %c0_15, %c0_16], %20 {strides = array<i32>} : memref<4x64x128xf32, #tpu.memory_space<vmem>>, vector<4x64x128xf32>,
    return
  }
  func.func @transform_0(%arg0: i32) -> (i32, i32, i32) {
    %c0_i32 = arith.constant 0 : i32
    %c0_i32_0 = arith.constant 0 : i32
    %c0_i32_1 = arith.constant 0 : i32
    return %arg0, %c0_i32, %c0_i32_0 : i32, i32, i32
  }
  func.func @transform_1(%arg0: i32) -> (i32, i32, i32) {
    %c0_i32 = arith.constant 0 : i32
    %c0_i32_0 = arith.constant 0 : i32
    %c0_i32_1 = arith.constant 0 : i32
    return %arg0, %c0_i32, %c0_i32_0 : i32, i32, i32
  }
  func.func @transform_2(%arg0: i32) -> (i32, i32, i32) {
    %c0_i32 = arith.constant 0 : i32
    %c0_i32_0 = arith.constant 0 : i32
    %c0_i32_1 = arith.constant 0 : i32
    return %arg0, %c0_i32, %c0_i32_0 : i32, i32, i32
  }
  func.func @transform_3(%arg0: i32) -> (i32, i32) {
    %c0_i32 = arith.constant 0 : i32
    %c0_i32_0 = arith.constant 0 : i32
    %c0_i32_1 = arith.constant 0 : i32
    return %c0_i32, %c0_i32_0 : i32, i32
  }
  func.func @transform_4(%arg0: i32) -> (i32, i32, i32) {
    %c0_i32 = arith.constant 0 : i32
    %c0_i32_0 = arith.constant 0 : i32
    %c0_i32_1 = arith.constant 0 : i32
    return %arg0, %c0_i32, %c0_i32_0 : i32, i32, i32
  }
}

</mosaic_0001>

<bundles_post_ra>
// kernel: tpu_custom_call.1
= control target key start
LH: loop header
LB: loop body
LE: loop exit
PB: predicated region body
PF: predicated region fallthrough
CT: control target
= control target key end

     0   :  { %s3770_s0 = inlined_call_operand.hbm [shape: f32[8,64,128], index: 0, kind: input, shape index: {}]   ;;  %s3771_s1 = inlined_call_operand.hbm [shape: f32[8,64,128], index: 1, kind: input, shape index: {}]   ;;  %s3772_s2 = inlined_call_operand.hbm [shape: f32[8,64,128], index: 2, kind: input, shape index: {}]   ;;  %s3773_s3 = inlined_call_operand.hbm [shape: f32[64,128], index: 3, kind: input, shape index: {}]   ;;  %s3774_s4 = inlined_call_operand.hbm [shape: f32[8,64,128], index: 4, kind: output, shape index: {}]  }
   0x1   :  { %3793 = sst [smem:[#allocation20_spill]] %s3770_s0 }
   0x2   :  { %3794 = sst [smem:[#allocation21_spill]] %s3771_s1 }
   0x3   :  { %9 = vsyncpa [#allocation3], 0 }
   0x4   :  { %11 = vsyncpa [#allocation3 + $0x1], 0 }
   0x5   :  { %12 = vsyncpa [#allocation6], 0 }
   0x6   :  { %14 = vsyncpa [#allocation6 + $0x1], 0 }
   0x7   :  { %15 = vsyncpa [#allocation9], 0 }
   0x8   :  { %16 = vsyncpa [#allocation4], 0 }
   0x9   :  { %18 = vsyncpa [#allocation4 + $0x1], 0  ;;  %s2920_s15 = smov 0   ;;  %s2922_s16 = smov 0  }
   0xa   :  { %s2924_s17 = smov 0   ;;  %s2926_s18 = smov 0  }
   0xb LB: > { %3795 = sst [smem:[#allocation15_spill]] %s2880_s17  ;;  %s2941_s19 = sadd.s32 1, %s2884_s18   ;;  %s2884_s18 = sphi %s2926_s18, %s3824_s18   ;;  %s2880_s17 = sphi %s2924_s17, %s3826_s17   ;;  %s2876_s16 = sphi %s2922_s16, %s3828_s16   ;;  %s2872_s15 = sphi %s2920_s15, %s3827_s15  }
   0xc   : > { %3796 = sst [smem:[#allocation16_spill]] %s2884_s18  ;;  %s31_s20 = sadd.s32 1, %s2880_s17 }
   0xd   : > { %3797 = sst [smem:[#allocation17_spill]] %s2941_s19  ;;  %s28_s21 = ssub.s32 %s2884_s18, %s2941_s19 }
   0xe   : > { %p3775_p0 = scmp.ne.s32.totalorder %s2880_s17, %s2876_s16  ;;  %p29_p1 = scmp.eq.s32.totalorder %s28_s21, 0 }
   0xf   : > { %p39_p2 = scmp.eq.s32.totalorder %s2884_s18, 0  ;;  %p2524_p5 = scmp.lt.s32.totalorder %s2884_s18, 2 }
  0x10   : > { %s2950_s22 = scalar_select %p29_p1, %s2880_s17, %s31_s20  }
  0x11   : > { %p40_p3 = por %p39_p2, %p3775_p0  ;;  %s180_s23 = sand.u32 1, %s2880_s17  }
  0x12   : > { %3798 = sst [smem:[#allocation18_spill]] %s2950_s22  ;;  %s2960_s24 = sshll.u32 %s180_s23, 8 }
  0x13   : > { %s2963_s25 = sshll.u32 %s2884_s18, 12  ;;  %p2965_p6 = pnand %p2524_p5, %p40_p3 }
  0x14   : > { %s202_s27 = sand.u32 1, %s2884_s18   ;;  %s3800_s1 = sld [smem:[#allocation21_spill]] }
  0x15   : > { %s3799_s26 = scalar_select %p2965_p6, 1, 0 }
  0x16   : > { %s206_s5 = scalar_lea.vmem [#allocation5], %s2960_s24  ;;  %s2979_s7 = scalar_lea.sflag [#allocation6], %s202_s27 }
  0x17   : > { %s214_s6 = sshll.u32 %s206_s5, 4  ;;  %p2985_p8 = pneg %p2965_p6  ;;  %s2977_s6 = int_to_ptr.vmem [resolvable:$true] %s214_s6 }
  0x19   : > { %s3801_s9 = scalar_select %p2985_p8, 1, 0 }
  0x1a   : > { %s2974_s30 = scalar_lea.hbm %s3800_s1, %s2963_s25  ;;  %s2697_s12 = scalar_lea.hbm %s3800_s1, 8192 }
  0x1b   : > { %s2692_s8 = scalar_lea.hbm %s2974_s30, 4096  ;;  %p2698_p11 = scmp.lt.u32.totalorder %s2974_s30, %s3800_s1 }
  0x1c   : > { %p2693_p7 = scmp.ne.s32.totalorder %s2974_s30, %s2692_s8  ;;  %p2699_p12 = scmp.lt.u32.totalorder %s2697_s12, %s2692_s8 }
  0x1d   : > { %p2701_p1 = scmp.lt.u32.totalorder %s2692_s8, %s2974_s30 }
  0x1e   : > { %p2695_p9 = pnand %p2985_p8, %p2693_p7  ;;  %p2700_p13 = por %p2699_p12, %p2698_p11 }
  0x20   : > { %p2696_p10 = pneg %p2695_p9  ;;  %p2702_p2 = por %p2701_p1, %p2700_p13 }
  0x22   : > { %p2703_p3 = pnand %p2702_p2, %p2696_p10 }
  0x24   : > { %2706 = shalt.err (!%p2703_p3)
}
  0x25   : > { %s2707_s20 = scalar_lea.vmem %s2977_s6, 4096  ;;  %s2886_s21 = smov [#allocation5]  }
  0x26   : > { %p2708_p5 = scmp.ne.s32.totalorder %s2977_s6, %s2707_s20  ;;  %s2712_s27 = sshll.u32 %s2886_s21, 4  ;;  %s2713_s27 = int_to_ptr.vmem [resolvable:$false] %s2712_s27 }
  0x27   : > { %s2714_s28 = scalar_lea.vmem %s2713_s27, 8192  ;;  %p2715_p4 = scmp.lt.s32.totalorder %s2977_s6, %s2713_s27 }
  0x28   : > { %p2710_p7 = pnand %p2708_p5, %p2985_p8  ;;  %p2716_p0 = scmp.lt.s32.totalorder %s2714_s28, %s2707_s20 }
  0x2a   : > { %p2711_p9 = pneg %p2710_p7  ;;  %p2717_p11 = por %p2716_p0, %p2715_p4 }
  0x2c   : > { %p2718_p12 = pnand %p2717_p11, %p2711_p9 }
  0x2e   : > { %2721 = shalt.err (!%p2718_p12)
}
  0x2f   : > { %s3776_s29 = smov 128   ;;  %s3778_s5 = smov 8  }
  0x30   : > { %2515 = dma.hbm_to_vmem [thread:$0]  (!%p2965_p6), %s2974_s30, 4096, %s2977_s6, %s2979_s7, %s3776_s29, %s3776_s29, %s3778_s5  }
  0x31   : > { %s3013_s8 = sadd.s32 4294967295, %s2884_s18   ;;  %s1945_s10 = sadd.s32 4294967294, %s2884_s18  }
  0x32   : > { %p44_p0 = scmp.ne.s32.totalorder %s2876_s16, %s2872_s15  ;;  %p3780_p4 = scmp.eq.s32.totalorder %s3013_s8, 0 }
  0x33   : > { %p141_p10 = scmp.eq.s32.totalorder %s3013_s8, 1  ;;  %p147_p13 = scmp.eq.s32.totalorder %s1945_s10, 1 }
  0x34   : > { %p3022_p1 = por %p3780_p4, %p44_p0  ;;  %p1946_p2 = scmp.ge.s32.totalorder %s2884_s18, 1 }
  0x35   : > { %p3803_p3 = scmp.ne.s32.totalorder %s2880_s17, %s2876_s16  ;;  %p3034_p7 = por %p147_p13, %p44_p0 }
  0x36   : > { %s3802_s11 = scalar_select %p3022_p1, 1, 0 }
  0x37   : > { %p3030_p5 = por %p141_p10, %p3803_p3  ;;  %p154_p9 = scmp.lt.s32.totalorder %s2884_s18, 3 }
  0x38   : > { %s3805_s6 = scalar_select %p3034_p7, 1, 0 }
  0x39   : > { %s3804_s30 = scalar_select %p3030_p5, 1, 0 }
  0x3a   : > { %3806 = sst [smem:[#allocation19_spill]] %s3805_s6  ;;  %p3039_p11 = pnand %p1946_p2, %p154_p9 }
  0x3b   : > { %s2889_s13 = smov [#allocation8]   ;;  %s3808_s0 = sld [smem:[#allocation20_spill]] }
  0x3c   : > { %s3807_s12 = scalar_select %p3039_p11, 1, 0 }
  0x3d   : > { %s166_s14 = sshll.u32 %s2889_s13, 4  ;;  %p2505_p12 = pneg %p3039_p11  ;;  %s3043_s14 = int_to_ptr.vmem [resolvable:$true] %s166_s14 }
  0x3e   : > { %s184_s28 = scalar_lea.vmem [#allocation2], %s2960_s24  ;;  %s3064_s13 = scalar_lea.sflag [#allocation3], %s180_s23 }
  0x3f   : > { %s192_s10 = sshll.u32 %s184_s28, 4  ;;  %p3056_p0 = pnand %p2505_p12, %p3780_p4  ;;  %s3060_s10 = int_to_ptr.vmem [resolvable:$true] %s192_s10 }
  0x41   : > { %s3051_s27 = scalar_lea.hbm %s3808_s0, %s2963_s25  ;;  %s2727_s1 = scalar_lea.hbm %s3808_s0, 8192 }
  0x42   : > { %s3809_s29 = scalar_select %p3056_p0, 1, 0 }
  0x43   : > { %s2722_s5 = scalar_lea.hbm %s3051_s27, 4096  ;;  %p2728_p3 = scmp.lt.u32.totalorder %s3051_s27, %s3808_s0 }
  0x44   : > { %p2723_p10 = scmp.ne.s32.totalorder %s3051_s27, %s2722_s5  ;;  %p2729_p9 = scmp.lt.u32.totalorder %s2727_s1, %s2722_s5 }
  0x45   : > { %p2731_p4 = scmp.lt.u32.totalorder %s2722_s5, %s3051_s27 }
  0x46   : > { %p2725_p13 = pnand %p2723_p10, %p2985_p8  ;;  %p2730_p12 = por %p2729_p9, %p2728_p3 }
  0x48   : > { %p2726_p2 = pneg %p2725_p13  ;;  %p2732_p7 = por %p2731_p4, %p2730_p12 }
  0x4a   : > { %p2733_p5 = pnand %p2732_p7, %p2726_p2 }
  0x4c   : > { %2736 = shalt.err (!%p2733_p5)
}
  0x4d   : > { %s2737_s23 = scalar_lea.vmem %s3060_s10, 4096  ;;  %s2890_s20 = smov [#allocation2]  }
  0x4e   : > { %p2738_p10 = scmp.ne.s32.totalorder %s3060_s10, %s2737_s23  ;;  %s2742_s21 = sshll.u32 %s2890_s20, 4  ;;  %s2743_s21 = int_to_ptr.vmem [resolvable:$false] %s2742_s21 }
  0x4f   : > { %s2744_s22 = scalar_lea.vmem %s2743_s21, 8192  ;;  %p2745_p11 = scmp.lt.s32.totalorder %s3060_s10, %s2743_s21 }
  0x50   : > { %p2740_p13 = pnand %p2738_p10, %p2985_p8  ;;  %p2746_p0 = scmp.lt.s32.totalorder %s2744_s22, %s2737_s23 }
  0x52   : > { %p2741_p1 = pneg %p2740_p13  ;;  %p2747_p3 = por %p2746_p0, %p2745_p11 }
  0x54   : > { %p2748_p9 = pnand %p2747_p3, %p2741_p1 }
  0x56   : > { %2751 = shalt.err (!%p2748_p9)
}
  0x57   : > { %s3810_s1 = smov 8   ;;  %s3811_s5 = smov 128  }
  0x58   : > { %2512 = dma.hbm_to_vmem [thread:$0]  (!%p2965_p6), %s3051_s27, 4096, %s3060_s10, %s3064_s13, %s3811_s5, %s3811_s5, %s3810_s1  }
  0x59   : > { %s3095_s0 = scalar_lea.hbm %s3772_s2, %s2963_s25  ;;  %s2752_s22 = scalar_lea.hbm %s3773_s3, 1024 }
  0x5a   : > { %p2753_p4 = scmp.ne.s32.totalorder %s3773_s3, %s2752_s22  ;;  %p3812_p1 = scmp.ne.s32.totalorder %s3809_s29, 0 }
  0x5b   : > { %p2759_p0 = scmp.lt.u32.totalorder %s2752_s22, %s3773_s3 }
  0x5c   : > { %p2754_p5 = pneg %p3812_p1 }
  0x5e   : > { %p2755_p7 = pnand %p2754_p5, %p2753_p4 }
  0x60   : > { %p2756_p11 = pneg %p2755_p7 }
  0x62   : > { %p2761_p2 = pnand %p2759_p0, %p2756_p11 }
  0x64   : > { %2764 = shalt.err (!%p2761_p2)
}
  0x65   : > { %s2765_s25 = scalar_lea.vmem %s3043_s14, 1024  ;;  %p2773_p3 = scmp.lt.s32.totalorder %s3043_s14, %s3043_s14 }
  0x66   : > { %p2766_p12 = scmp.ne.s32.totalorder %s3043_s14, %s2765_s25  ;;  %p2774_p9 = scmp.lt.s32.totalorder %s2765_s25, %s2765_s25 }
  0x68   : > { %p2768_p10 = pnand %p2766_p12, %p2754_p5  ;;  %p2775_p6 = por %p2774_p9, %p2773_p3 }
  0x6a   : > { %p2769_p13 = pneg %p2768_p10 }
  0x6c   : > { %p2776_p8 = pnand %p2775_p6, %p2769_p13 }
  0x6e   : > { %2779 = shalt.err (!%p2776_p8)
}
  0x6f   : > { %2508 = dma.hbm_to_vmem [thread:$0]  (!%p3812_p1), %s3773_s3, 1024, %s3043_s14, [#allocation9], %s3811_s5, %s3811_s5, %s3810_s1  }
  0x70   : > { %s228_s19 = scalar_lea.vmem [#allocation7], %s2960_s24  ;;  %s2780_s27 = scalar_lea.hbm %s3095_s0, 4096 }
  0x71   : > { %s236_s6 = sshll.u32 %s228_s19, 4  ;;  %p2781_p6 = scmp.ne.s32.totalorder %s3095_s0, %s2780_s27  ;;  %s3122_s6 = int_to_ptr.vmem [resolvable:$true] %s236_s6 }
  0x72   : > { %p3813_p8 = scmp.ne.s32.totalorder %s3801_s9, 0  ;;  %s2785_s13 = scalar_lea.hbm %s3772_s2, 8192 }
  0x73   : > { %p2786_p7 = scmp.lt.u32.totalorder %s3095_s0, %s3772_s2  ;;  %p2787_p11 = scmp.lt.u32.totalorder %s2785_s13, %s2780_s27 }
  0x74   : > { %p2783_p4 = pnand %p2781_p6, %p3813_p8  ;;  %p2789_p1 = scmp.lt.u32.totalorder %s2780_s27, %s3095_s0 }
  0x75   : > { %p2788_p0 = por %p2787_p11, %p2786_p7 }
  0x76   : > { %p2784_p5 = pneg %p2783_p4 }
  0x77   : > { %p2790_p2 = por %p2789_p1, %p2788_p0 }
  0x79   : > { %p2791_p12 = pnand %p2790_p2, %p2784_p5 }
  0x7b   : > { %2794 = shalt.err (!%p2791_p12)
}
  0x7c   : > { %s2795_s24 = scalar_lea.vmem %s3122_s6, 4096  ;;  %s2891_s14 = smov [#allocation7]  }
  0x7d   : > { %p2796_p10 = scmp.ne.s32.totalorder %s3122_s6, %s2795_s24  ;;  %s2800_s23 = sshll.u32 %s2891_s14, 4  ;;  %s2801_s23 = int_to_ptr.vmem [resolvable:$false] %s2800_s23 }
  0x7e   : > { %s2802_s21 = scalar_lea.vmem %s2801_s23, 8192  ;;  %p2803_p9 = scmp.lt.s32.totalorder %s3122_s6, %s2801_s23 }
  0x7f   : > { %p2798_p13 = pnand %p2796_p10, %p3813_p8  ;;  %p2804_p6 = scmp.lt.s32.totalorder %s2802_s21, %s2795_s24 }
  0x81   : > { %p2799_p3 = pneg %p2798_p13  ;;  %p2805_p4 = por %p2804_p6, %p2803_p9 }
  0x83   : > { %p2806_p7 = pnand %p2805_p4, %p2799_p3 }
  0x85   : > { %2809 = shalt.err (!%p2806_p7)
}
  0x86   : > { %p3814_p5 = scmp.ne.s32.totalorder %s3799_s26, 0  ;;  %p3815_p8 = scmp.ne.s32.totalorder %s3807_s12, 0 }
  0x87   : > { %s3152_s9 = sand.u32 (!%p3815_p8), 1, %s2876_s16   ;;  %p3816_p11 = scmp.ne.s32.totalorder (!%p3815_p8), %s3802_s11, 0 }
  0x88   : > { %2518 = dma.hbm_to_vmem [thread:$0]  (!%p3814_p5), %s3095_s0, 4096, %s3122_s6, %s2979_s7, %s3811_s5, %s3811_s5, %s3810_s1  }
  0x89   : > { %248 = sbr.rel (%p3815_p8) target bundleno = 1007 (0x3ef), region = 36  ;;  %s3155_s22 = sshll.u32 (!%p3815_p8), %s3152_s9, 8 }
  0x8a   : > { %s251_s26 = scalar_lea.sflag (!%p3815_p8), [#allocation3], %s3152_s9  ;;  %s3159_s25 = scalar_lea.vmem (!%p3815_p8), [#allocation2], %s3155_s22 }
  0x90   : > { %2855 = dma.done.wait (%p3816_p11), %s251_s26, 4096  }
  0x91   : > { %2857 = vsyncadd (%p3816_p11), %s251_s26, 4294963200  ;;  %s259_s0 = sand.u32 1, %s3013_s8   ;;  %s3167_s12 = scalar_lea.vmem [#allocation5], %s3155_s22 }
  0x92   : > { %s260_s7 = scalar_lea.sflag [#allocation6], %s259_s0 }
  0x93   : > { %2859 = dma.done.wait (%p3816_p11), %s260_s7, 8192  }
  0x94   : > { %2861 = vsyncadd (%p3816_p11), %s260_s7, 4294959104  ;;  %s3174_s1 = scalar_lea.vmem [#allocation7], %s3155_s22  ;;  %p3817_p0 = scmp.eq.s32.totalorder %s3013_s8, 0 }
  0x96   : > { %2863 = dma.done.wait (%p3817_p0), [#allocation9], 1024   ;;  %p3818_p1 = pmov %p3817_p0 }
  0x97   : > { %v379_v0 = vld [vmem:[%s3167_s12] sm:$0xff]  ;;  %v380_v1 = vld [vmem:[%s3167_s12 + $0x8] sm:$0xff]  ;;  %v381_v10 = vld [vmem:[%s3167_s12 + $0x10] sm:$0xff]  ;;  %vm871_vm0 = vcmask 523264   ;;  %s3685_s11 = scalar_lea.vmem [#allocation10], %s3155_s22  ;;  %s2012_s5 = sshll.u32 %s3013_s8, 12 }
  0x98   : > { %2865 = vsyncadd (%p3818_p1), [#allocation9], 4294966272  ;;  %v3182_v2 = vld [vmem:[#allocation8] sm:$0xff]  ;;  %v3184_v3 = vld [vmem:[#allocation8 + $0x8] sm:$0xff]  ;;  %s1819_s17 = sshll.u32 %s3685_s11, 4  ;;  %s3722_s6 = scalar_lea.hbm %s3774_s4, %s2012_s5  ;;  %s3724_s17 = int_to_ptr.vmem [resolvable:$true] %s1819_s17 }
  0x99   : > { %v419_v4 = vadd.f32 %v3182_v2, %v379_v0  ;;  %v387_v5 = vld [vmem:[%s3167_s12 + $0x40] sm:$0xff]  ;;  %v388_v6 = vld [vmem:[%s3167_s12 + $0x48] sm:$0xff]  ;;  %v420_v7 = vadd.f32 %v3184_v3, %v380_v1  ;;  %v382_v11 = vld [vmem:[%s3167_s12 + $0x18] sm:$0xff]  ;;  %s1805_s8 = scalar_lea.sflag [#allocation4], %s3152_s9  ;;  %s2810_s27 = scalar_lea.vmem %s3724_s17, 4096 }
  0x9a   : > { %v427_v8 = vadd.f32 %v3182_v2, %v387_v5  ;;  %v428_v9 = vadd.f32 %v3184_v3, %v388_v6  ;;  %v3194_v12 = vld [vmem:[#allocation8 + $0x10] sm:$0xff]  ;;  %v3196_v13 = vld [vmem:[#allocation8 + $0x18] sm:$0xff]  ;;  %v383_v21 = vld [vmem:[%s3167_s12 + $0x20] sm:$0xff]  ;;  %p2811_p2 = scmp.ne.s32.totalorder %s3724_s17, %s2810_s27  ;;  %p3819_p12 = scmp.ne.s32.totalorder %s3804_s30, 0 }
  0x9b   : > { %v421_v14 = vadd.f32 %v3194_v12, %v381_v10  ;;  %v389_v15 = vld [vmem:[%s3167_s12 + $0x50] sm:$0xff]  ;;  %v390_v16 = vld [vmem:[%s3167_s12 + $0x58] sm:$0xff]  ;;  %v2365_v17 = vpack.c.bf16 %v420_v7, %v419_v4  ;;  %v422_v19 = vadd.f32 %v3196_v13, %v382_v11  ;;  %v384_v22 = vld [vmem:[%s3167_s12 + $0x28] sm:$0xff]  ;;  %s2892_s29 = smov [#allocation10]  }
  0x9c   : > { %v2381_v18 = vpack.c.bf16 %v428_v9, %v427_v8  ;;  %v429_v20 = vadd.f32 %v3194_v12, %v389_v15  ;;  %v3205_v23 = vld [vmem:[#allocation8 + $0x20] sm:$0xff]  ;;  %v430_v24 = vadd.f32 %v3196_v13, %v390_v16  ;;  %v3208_v25 = vld [vmem:[#allocation8 + $0x28] sm:$0xff]  ;;  %v385_v40 = vld [vmem:[%s3167_s12 + $0x30] sm:$0xff]  ;;  %p2812_p10 = pnand %p2811_p2, %p3819_p12  ;;  %s2814_s10 = sshll.u32 %s2892_s29, 4  ;;  %s2815_s10 = int_to_ptr.vmem [resolvable:$false] %s2814_s10 }
  0x9d   : > { %v391_v26 = vld [vmem:[%s3167_s12 + $0x60] sm:$0xff]  ;;  %v392_v27 = vld [vmem:[%s3167_s12 + $0x68] sm:$0xff]  ;;  %2366 = vmatprep.subr.bf16.mxu0 %v2365_v17  ;;  %v2369_v28 = vpack.c.bf16 %v422_v19, %v421_v14  ;;  %v423_v30 = vadd.f32 %v3205_v23, %v383_v21  ;;  %v424_v31 = vadd.f32 %v3208_v25, %v384_v22  ;;  %v386_v41 = vld [vmem:[%s3167_s12 + $0x38] sm:$0xff]  ;;  %s2816_s13 = scalar_lea.vmem %s2815_s10, 8192  ;;  %p2817_p3 = scmp.lt.s32.totalorder %s3724_s17, %s2815_s10 }
  0x9e   : > { %2382 = vmatprep.subr.bf16.mxu1 %v2381_v18  ;;  %2368 = vmatpush3.bf16.xpose.msra.mxu0 %v2365_v17  ;;  %v2385_v29 = vpack.c.bf16 %v430_v24, %v429_v20  ;;  %v431_v32 = vadd.f32 %v3205_v23, %v391_v26  ;;  %v432_v33 = vadd.f32 %v3208_v25, %v392_v27  ;;  %v315_v34 = vld [vmem:[%s3159_s25] sm:$0xff]  ;;  %v3220_v42 = vld [vmem:[#allocation8 + $0x30] sm:$0xff]  ;;  %v3222_v43 = vld [vmem:[#allocation8 + $0x38] sm:$0xff]  ;;  %p2813_p13 = pneg %p2812_p10  ;;  %p2818_p9 = scmp.lt.s32.totalorder %s2816_s13, %s2810_s27 }
  0x9f   : > { %2384 = vmatpush3.bf16.xpose.msra.mxu1 %v2381_v18  ;;  %2370 = vmatprep.subr.bf16.mxu0 %v2369_v28  ;;  %v323_v35 = vld [vmem:[%s3159_s25 + $0x40] sm:$0xff]  ;;  %v347_v36 = vmul.f32 0.088388346, %v315_v34  ;;  %v2373_v38 = vpack.c.bf16 %v424_v31, %v423_v30  ;;  %v393_v44 = vld [vmem:[%s3167_s12 + $0x70] sm:$0xff]  ;;  %v394_v45 = vld [vmem:[%s3167_s12 + $0x78] sm:$0xff]  ;;  %v425_v46 = vadd.f32 %v3220_v42, %v385_v40  ;;  %v426_v47 = vadd.f32 %v3222_v43, %v386_v41 }
  0xa0   : > { %2386 = vmatprep.subr.bf16.mxu1 %v2385_v29  ;;  %v355_v37 = vmul.f32 0.088388346, %v323_v35  ;;  %v2389_v39 = vpack.c.bf16 %v432_v33, %v431_v32  ;;  %v433_v48 = vadd.f32 %v3220_v42, %v393_v44  ;;  %v434_v49 = vadd.f32 %v3222_v43, %v394_v45  ;;  %v403_v52 = vld [vmem:[%s3167_s12 + $0xc0] sm:$0xff]  ;;  %v404_v53 = vld [vmem:[%s3167_s12 + $0xc8] sm:$0xff]  ;;  %v405_v62 = vld [vmem:[%s3167_s12 + $0xd0] sm:$0xff]  ;;  %p2819_p6 = por %p2818_p9, %p2817_p3 }
  0xa1   : > { %2157 = vmatprep.mubr.f32.mxu0 %v347_v36  ;;  %v2377_v50 = vpack.c.bf16 %v426_v47, %v425_v46  ;;  %v395_v54 = vld [vmem:[%s3167_s12 + $0x80] sm:$0xff]  ;;  %v396_v55 = vld [vmem:[%s3167_s12 + $0x88] sm:$0xff]  ;;  %v443_v56 = vadd.f32 %v3182_v2, %v403_v52  ;;  %v444_v57 = vadd.f32 %v3184_v3, %v404_v53  ;;  %v406_v63 = vld [vmem:[%s3167_s12 + $0xd8] sm:$0xff] }
  0xa2   : > { %2185 = vmatprep.mubr.f32.mxu1 %v355_v37  ;;  %v2393_v51 = vpack.c.bf16 %v434_v49, %v433_v48  ;;  %v435_v58 = vadd.f32 %v3182_v2, %v395_v54  ;;  %v436_v59 = vadd.f32 %v3184_v3, %v396_v55  ;;  %v397_v0 = vld [vmem:[%s3167_s12 + $0x90] sm:$0xff]  ;;  %v398_v1 = vld [vmem:[%s3167_s12 + $0x98] sm:$0xff]  ;;  %v316_v4 = vld [vmem:[%s3159_s25 + $0x8] sm:$0xff]  ;;  %v445_v3 = vadd.f32 %v3194_v12, %v405_v62  ;;  %p2820_p4 = pnand %p2819_p6, %p2813_p13 }
  0xa3   : > { %v2413_v60 = vpack.c.bf16 %v444_v57, %v443_v56  ;;  %v324_v5 = vld [vmem:[%s3159_s25 + $0x48] sm:$0xff]  ;;  %v325_v2 = vld [vmem:[%s3159_s25 + $0x50] sm:$0xff]  ;;  %v446_v7 = vadd.f32 %v3196_v13, %v406_v63  ;;  %v437_v8 = vadd.f32 %v3194_v12, %v397_v0  ;;  %v438_v9 = vadd.f32 %v3196_v13, %v398_v1  ;;  %v326_v15 = vld [vmem:[%s3159_s25 + $0x58] sm:$0xff] }
  0xa4   : > { %v2397_v61 = vpack.c.bf16 %v436_v59, %v435_v58  ;;  %v317_v6 = vld [vmem:[%s3159_s25 + $0x10] sm:$0xff]  ;;  %v348_v10 = vmul.f32 0.088388346, %v316_v4  ;;  %v356_v11 = vmul.f32 0.088388346, %v324_v5  ;;  %v318_v16 = vld [vmem:[%s3159_s25 + $0x18] sm:$0xff] }
  0xa5   : > { %v357_v14 = vmul.f32 0.088388346, %v325_v2  ;;  %v349_v17 = vmul.f32 0.088388346, %v317_v6  ;;  %v327_v18 = vld [vmem:[%s3159_s25 + $0x60] sm:$0xff]  ;;  %v2417_v21 = vpack.c.bf16 %v446_v7, %v445_v3  ;;  %v2401_v22 = vpack.c.bf16 %v438_v9, %v437_v8  ;;  %v408_v24 = vld [vmem:[%s3167_s12 + $0xe8] sm:$0xff] }
  0xa6   : > { %2372 = vmatpush3.bf16.xpose.msra.mxu0 %v2369_v28  ;;  %v319_v19 = vld [vmem:[%s3159_s25 + $0x20] sm:$0xff]  ;;  %v400_v27 = vld [vmem:[%s3167_s12 + $0xa8] sm:$0xff]  ;;  %v358_v12 = vmul.f32 0.088388346, %v326_v15  ;;  %v350_v13 = vmul.f32 0.088388346, %v318_v16  ;;  %v448_v33 = vadd.f32 %v3208_v25, %v408_v24 }
  0xa7   : > { %2388 = vmatpush3.bf16.xpose.msra.mxu1 %v2385_v29  ;;  %2374 = vmatprep.subr.bf16.mxu0 %v2373_v38  ;;  %v407_v20 = vld [vmem:[%s3167_s12 + $0xe0] sm:$0xff]  ;;  %v359_v28 = vmul.f32 0.088388346, %v327_v18  ;;  %v351_v29 = vmul.f32 0.088388346, %v319_v19  ;;  %v328_v30 = vld [vmem:[%s3159_s25 + $0x68] sm:$0xff]  ;;  %v440_v35 = vadd.f32 %v3208_v25, %v400_v27 }
  0xa8   : > { %2390 = vmatprep.subr.bf16.mxu1 %v2389_v39  ;;  %v399_v26 = vld [vmem:[%s3167_s12 + $0xa0] sm:$0xff]  ;;  %v447_v31 = vadd.f32 %v3205_v23, %v407_v20  ;;  %v320_v32 = vld [vmem:[%s3159_s25 + $0x28] sm:$0xff]  ;;  %v329_v36 = vld [vmem:[%s3159_s25 + $0x70] sm:$0xff]  ;;  %v360_v37 = vmul.f32 0.088388346, %v328_v30 }
  0xa9   : > { %v439_v34 = vadd.f32 %v3205_v23, %v399_v26  ;;  %v330_v40 = vld [vmem:[%s3159_s25 + $0x78] sm:$0xff]  ;;  %v361_v44 = vmul.f32 0.088388346, %v329_v36  ;;  %v409_v45 = vld [vmem:[%s3167_s12 + $0xf0] sm:$0xff]  ;;  %v339_v46 = vld [vmem:[%s3159_s25 + $0xc0] sm:$0xff] }
  0xaa   : > { %v322_v23 = vld [vmem:[%s3159_s25 + $0x38] sm:$0xff]  ;;  %v2421_v41 = vpack.c.bf16 %v448_v33, %v447_v31  ;;  %v331_v47 = vld [vmem:[%s3159_s25 + $0x80] sm:$0xff]  ;;  %v362_v52 = vmul.f32 0.088388346, %v330_v40  ;;  %v449_v54 = vadd.f32 %v3220_v42, %v409_v45  ;;  %v371_v55 = vmul.f32 0.088388346, %v339_v46 }
  0xab   : > { %v2405_v25 = vpack.c.bf16 %v440_v35, %v439_v34  ;;  %v410_v49 = vld [vmem:[%s3167_s12 + $0xf8] sm:$0xff]  ;;  %v354_v53 = vmul.f32 0.088388346, %v322_v23  ;;  %v363_v56 = vmul.f32 0.088388346, %v331_v47  ;;  %v341_v62 = vld [vmem:[%s3159_s25 + $0xd0] sm:$0xff] }
  0xac   : > { %v450_v57 = vadd.f32 %v3222_v43, %v410_v49  ;;  %v333_v63 = vld [vmem:[%s3159_s25 + $0x90] sm:$0xff]  ;;  %v373_v4 = vmul.f32 0.088388346, %v341_v62  ;;  %v342_v2 = vld [vmem:[%s3159_s25 + $0xd8] sm:$0xff]  ;;  %v343_v3 = vld [vmem:[%s3159_s25 + $0xe0] sm:$0xff] }
  0xad   : > { %v365_v5 = vmul.f32 0.088388346, %v333_v63  ;;  %v334_v6 = vld [vmem:[%s3159_s25 + $0x98] sm:$0xff]  ;;  %v335_v7 = vld [vmem:[%s3159_s25 + $0xa0] sm:$0xff]  ;;  %v374_v8 = vmul.f32 0.088388346, %v342_v2 }
  0xae   : > { %2376 = vmatpush3.bf16.xpose.msra.mxu0 %v2373_v38  ;;  %v352_v38 = vmul.f32 0.088388346, %v320_v32  ;;  %v366_v9 = vmul.f32 0.088388346, %v334_v6  ;;  %v336_v15 = vld [vmem:[%s3159_s25 + $0xa8] sm:$0xff]  ;;  %v345_v16 = vld [vmem:[%s3159_s25 + $0xf0] sm:$0xff] }
  0xaf   : > { %2392 = vmatpush3.bf16.xpose.msra.mxu1 %v2389_v39  ;;  %2378 = vmatprep.subr.bf16.mxu0 %v2377_v50  ;;  %v321_v39 = vld [vmem:[%s3159_s25 + $0x30] sm:$0xff]  ;;  %v368_v19 = vmul.f32 0.088388346, %v336_v15  ;;  %v377_v20 = vmul.f32 0.088388346, %v345_v16  ;;  %v338_v24 = vld [vmem:[%s3159_s25 + $0xb8] sm:$0xff] }
  0xb0   : > { %2394 = vmatprep.subr.bf16.mxu1 %v2393_v51  ;;  %v353_v48 = vmul.f32 0.088388346, %v321_v39  ;;  %v370_v27 = vmul.f32 0.088388346, %v338_v24 }
  0xb6   : > { %2380 = vmatpush3.bf16.xpose.msra.mxu0 %v2377_v50  ;;  %v401_v50 = vld [vmem:[%s3167_s12 + $0xb0] sm:$0xff] }
  0xb7   : > { %2396 = vmatpush3.bf16.xpose.msra.mxu1 %v2393_v51  ;;  %2398 = vmatprep.subr.bf16.mxu0 %v2397_v61  ;;  %v402_v51 = vld [vmem:[%s3167_s12 + $0xb8] sm:$0xff]  ;;  %v441_v58 = vadd.f32 %v3220_v42, %v401_v50  ;;  %v340_v42 = vld [vmem:[%s3159_s25 + $0xc8] sm:$0xff] }
  0xb8   : > { %2414 = vmatprep.subr.bf16.mxu1 %v2413_v60  ;;  %v442_v59 = vadd.f32 %v3222_v43, %v402_v51  ;;  %v332_v43 = vld [vmem:[%s3159_s25 + $0x88] sm:$0xff]  ;;  %v372_v0 = vmul.f32 0.088388346, %v340_v42 }
  0xb9   : > { %v364_v1 = vmul.f32 0.088388346, %v332_v43 }
  0xbd   : > { %2158 = vmatmul.mubr.f32.vlgmr.msra.gmra.mrb[0].mxu0 %v348_v10  ;;  %v375_v10 = vmul.f32 0.088388346, %v343_v3 }
  0xbe   : > { %2186 = vmatmul.mubr.f32.vlgmr.msra.gmra.mrb[0].mxu1 %v356_v11  ;;  %2400 = vmatpush3.bf16.xpose.msra.mxu0 %v2397_v61  ;;  %v2409_v61 = vpack.c.bf16 %v442_v59, %v441_v58  ;;  %v367_v11 = vmul.f32 0.088388346, %v335_v7 }
  0xbf   : > { %2416 = vmatpush3.bf16.xpose.msra.mxu1 %v2413_v60  ;;  %2188 = vmatprep.mubr.f32.mxu1 %v357_v14  ;;  %v2425_v60 = vpack.c.bf16 %v450_v57, %v449_v54  ;;  %v344_v14 = vld [vmem:[%s3159_s25 + $0xe8] sm:$0xff] }
  0xc0   : > { %2160 = vmatprep.mubr.f32.mxu0 %v349_v17  ;;  %2418 = vmatprep.subr.bf16.mxu1 %v2417_v21  ;;  %v337_v17 = vld [vmem:[%s3159_s25 + $0xb0] sm:$0xff]  ;;  %v376_v18 = vmul.f32 0.088388346, %v344_v14 }
  0xc1   : > { %2402 = vmatprep.subr.bf16.mxu0 %v2401_v22  ;;  %2161 = vmatmul.mubr.f32.gmra.mrb[2].mxu0 %v350_v13 }
  0xc2   : > { %2189 = vmatmul.mubr.f32.gmra.mrb[2].mxu1 %v358_v12  ;;  %2163 = vmatprep.mubr.f32.mxu0 %v351_v29 }
  0xc3   : > { %2191 = vmatprep.mubr.f32.mxu1 %v359_v28 }
  0xc5   : > { %2164 = vmatmul.mubr.f32.gmra.mrb[4].mxu0 %v352_v38 }
  0xc6   : > { %2192 = vmatmul.mubr.f32.gmra.mrb[4].mxu1 %v360_v37  ;;  %2404 = vmatpush3.bf16.xpose.msra.mxu0 %v2401_v22  ;;  %v346_v22 = vld [vmem:[%s3159_s25 + $0xf8] sm:$0xff] }
  0xc7   : > { %2420 = vmatpush3.bf16.xpose.msra.mxu1 %v2417_v21  ;;  %2406 = vmatprep.subr.bf16.mxu0 %v2405_v25  ;;  %v369_v21 = vmul.f32 0.088388346, %v337_v17  ;;  %v378_v26 = vmul.f32 0.088388346, %v346_v22 }
  0xc8   : > { %2422 = vmatprep.subr.bf16.mxu1 %v2421_v41  ;;  %2194 = vmatprep.mubr.f32.mxu1 %v361_v44 }
  0xc9   : > { %2166 = vmatprep.mubr.f32.mxu0 %v353_v48 }
  0xca   : > { %2195 = vmatmul.mubr.f32.gmra.mrb[6].mxu1 %v362_v52  ;;  %2167 = vmatmul.mubr.f32.gmra.mrb[6].mxu0 %v354_v53 }
  0xcb   : > { %2241 = vmatprep.mubr.f32.mxu1 %v371_v55  ;;  %2213 = vmatprep.mubr.f32.mxu0 %v363_v56 }
  0xce   : > { %2408 = vmatpush3.bf16.xpose.msra.mxu0 %v2405_v25 }
  0xcf   : > { %2424 = vmatpush3.bf16.xpose.msra.mxu1 %v2421_v41  ;;  %2410 = vmatprep.subr.bf16.mxu0 %v2409_v61 }
  0xd0   : > { %2426 = vmatprep.subr.bf16.mxu1 %v2425_v60 }
  0xd6   : > { %2412 = vmatpush3.bf16.xpose.msra.mxu0 %v2409_v61 }
  0xd7   : > { %2428 = vmatpush3.bf16.xpose.msra.mxu1 %v2425_v60 }
  0xdd   : > { %2214 = vmatmul.mubr.f32.vlgmr.msra.gmra.mrb[8].mxu0 %v364_v1 }
  0xde   : > { %2242 = vmatmul.mubr.f32.vlgmr.msra.gmra.mrb[8].mxu1 %v372_v0  ;;  %2216 = vmatprep.mubr.f32.mxu0 %v365_v5 }
  0xdf   : > { %2244 = vmatprep.mubr.f32.mxu1 %v373_v4 }
  0xe1   : > { %2217 = vmatmul.mubr.f32.gmra.mrb[10].mxu0 %v366_v9 }
  0xe2   : > { %2245 = vmatmul.mubr.f32.gmra.mrb[10].mxu1 %v374_v8  ;;  %2219 = vmatprep.mubr.f32.mxu0 %v367_v11 }
  0xe3   : > { %2247 = vmatprep.mubr.f32.mxu1 %v375_v10 }
  0xe5   : > { %2220 = vmatmul.mubr.f32.gmra.mrb[12].mxu0 %v368_v19 }
  0xe6   : > { %2248 = vmatmul.mubr.f32.gmra.mrb[12].mxu1 %v376_v18  ;;  %2222 = vmatprep.mubr.f32.mxu0 %v369_v21 }
  0xe7   : > { %2250 = vmatprep.mubr.f32.mxu1 %v377_v20 }
  0xe9   : > { %2223 = vmatmul.mubr.f32.gmra.mrb[14].mxu0 %v370_v27 }
  0xea   : > { %2251 = vmatmul.mubr.f32.gmra.mrb[14].mxu1 %v378_v26 }
 0x190   : > { %v3292_v12 = vpop.f32.mrb[0].mxu0 }
 0x191   : > { %v3294_v13 = vpop.f32.mrb[0].mxu1  ;;  %v3296_v28 = vpop.f32.mrb[1].mxu0  ;;  %v875_v29 = vsel %vm871_vm0, %v3292_v12, -inf }
 0x192   : > { %v3300_v30 = vpop.f32.mrb[1].mxu1  ;;  %876 = vmax.xlane.f32.xlu1 %v875_v29  ;;  %v872_v31 = vsel %vm871_vm0, %v3296_v28, -inf  ;;  %v899_v32 = vsel %vm871_vm0, %v3294_v13, -inf }
 0x193   : > { %873 = vmax.xlane.f32.xlu0 %v872_v31  ;;  %v896_v33 = vsel %vm871_vm0, %v3300_v30, -inf }
 0x194   : > { %v3310_v35 = vpop.f32.mrb[2].mxu0 }
 0x195   : > { %v3308_v34 = vpop.f32.mrb[2].mxu1  ;;  %v3312_v36 = vpop.f32.mrb[3].mxu0  ;;  %v881_v39 = vsel %vm871_vm0, %v3310_v35, -inf }
 0x196   : > { %v3314_v37 = vpop.f32.mrb[3].mxu1  ;;  %900 = vmax.xlane.f32.xlu1 %v899_v32  ;;  %v905_v38 = vsel %vm871_vm0, %v3308_v34, -inf  ;;  %v878_v45 = vsel %vm871_vm0, %v3312_v36, -inf }
 0x197   : > { %897 = vmax.xlane.f32.xlu0 %v896_v33  ;;  %v902_v44 = vsel %vm871_vm0, %v3314_v37, -inf }
 0x198   : > { %v3322_v23 = vpop.f32.mrb[4].mxu0 }
 0x199   : > { %v3320_v40 = vpop.f32.mrb[4].mxu1  ;;  %v3324_v41 = vpop.f32.mrb[5].mxu0  ;;  %v887_v51 = vsel %vm871_vm0, %v3322_v23, -inf }
 0x19a   : > { %v3326_v25 = vpop.f32.mrb[5].mxu1  ;;  %906 = vmax.xlane.f32.xlu1 %v905_v38  ;;  %v911_v50 = vsel %vm871_vm0, %v3320_v40, -inf  ;;  %v884_v53 = vsel %vm871_vm0, %v3324_v41, -inf }
 0x19b   : > { %882 = vmax.xlane.f32.xlu0 %v881_v39  ;;  %v908_v52 = vsel %vm871_vm0, %v3326_v25, -inf }
 0x19d   : > { %v3332_v46 = vpop.f32.mrb[6].mxu1  ;;  %v3334_v47 = vpop.f32.mrb[6].mxu0 }
 0x19e   : > { %v3336_v48 = vpop.f32.mrb[7].mxu0  ;;  %v3338_v49 = vpop.f32.mrb[7].mxu1  ;;  %903 = vmax.xlane.f32.xlu1 %v902_v44  ;;  %v917_v54 = vsel %vm871_vm0, %v3332_v46, -inf  ;;  %v893_v55 = vsel %vm871_vm0, %v3334_v47, -inf }
 0x19f   : > { %879 = vmax.xlane.f32.xlu0 %v878_v45  ;;  %v914_v56 = vsel %vm871_vm0, %v3338_v49, -inf  ;;  %v890_v57 = vsel %vm871_vm0, %v3336_v48, -inf }
 0x1a2   : > { %912 = vmax.xlane.f32.xlu1 %v911_v50 }
 0x1a3   : > { %888 = vmax.xlane.f32.xlu0 %v887_v51 }
 0x1a6   : > { %909 = vmax.xlane.f32.xlu1 %v908_v52 }
 0x1a7   : > { %885 = vmax.xlane.f32.xlu0 %v884_v53 }
 0x1aa   : > { %918 = vmax.xlane.f32.xlu1 %v917_v54 }
 0x1ab   : > { %894 = vmax.xlane.f32.xlu0 %v893_v55 }
 0x1ae   : > { %915 = vmax.xlane.f32.xlu1 %v914_v56 }
 0x1af   : > { %891 = vmax.xlane.f32.xlu0 %v890_v57 }
 0x1b0   : > { %v3358_v59 = vpop.f32.mrb[8].mxu0 }
 0x1b1   : > { %v3356_v58 = vpop.f32.mrb[8].mxu1  ;;  %v923_v61 = vsel %vm871_vm0, %v3358_v59, -inf  ;;  %v3364_v42 = vpop.f32.mrb[9].mxu0 }
 0x1b2   : > { %v947_v60 = vsel %vm871_vm0, %v3356_v58, -inf  ;;  %v3366_v43 = vpop.f32.mrb[9].mxu1  ;;  %v920_v63 = vsel %vm871_vm0, %v3364_v42, -inf }
 0x1b3   : > { %948 = vmax.xlane.f32.xlu1 %v947_v60  ;;  %924 = vmax.xlane.f32.xlu0 %v923_v61  ;;  %v944_v62 = vsel %vm871_vm0, %v3366_v43, -inf }
 0x1b4   : > { %v3374_v1 = vpop.f32.mrb[10].mxu0 }
 0x1b5   : > { %v3372_v0 = vpop.f32.mrb[10].mxu1  ;;  %v3376_v4 = vpop.f32.mrb[11].mxu0  ;;  %v929_v6 = vsel %vm871_vm0, %v3374_v1, -inf }
 0x1b6   : > { %v3378_v5 = vpop.f32.mrb[11].mxu1  ;;  %v953_v2 = vsel %vm871_vm0, %v3372_v0, -inf  ;;  %v926_v11 = vsel %vm871_vm0, %v3376_v4, -inf }
 0x1b7   : > { %945 = vmax.xlane.f32.xlu1 %v944_v62  ;;  %921 = vmax.xlane.f32.xlu0 %v920_v63  ;;  %v950_v10 = vsel %vm871_vm0, %v3378_v5, -inf }
 0x1b8   : > { %v3386_v7 = vpop.f32.mrb[12].mxu0 }
 0x1b9   : > { %v3384_v3 = vpop.f32.mrb[12].mxu1  ;;  %v3388_v8 = vpop.f32.mrb[13].mxu0  ;;  %v935_v19 = vsel %vm871_vm0, %v3386_v7, -inf }
 0x1ba   : > { %v3390_v9 = vpop.f32.mrb[13].mxu1  ;;  %v959_v18 = vsel %vm871_vm0, %v3384_v3, -inf  ;;  %v932_v21 = vsel %vm871_vm0, %v3388_v8, -inf }
 0x1bb   : > { %954 = vmax.xlane.f32.xlu1 %v953_v2  ;;  %930 = vmax.xlane.f32.xlu0 %v929_v6  ;;  %v956_v20 = vsel %vm871_vm0, %v3390_v9, -inf }
 0x1bc   : > { %v3398_v15 = vpop.f32.mrb[14].mxu0 }
 0x1bd   : > { %v3396_v14 = vpop.f32.mrb[14].mxu1  ;;  %v3402_v17 = vpop.f32.mrb[15].mxu0  ;;  %v941_v27 = vsel %vm871_vm0, %v3398_v15, -inf }
 0x1be   : > { %v3400_v16 = vpop.f32.mrb[15].mxu1  ;;  %v938_v24 = vsel %vm871_vm0, %v3402_v17, -inf  ;;  %v965_v26 = vsel %vm871_vm0, %v3396_v14, -inf }
 0x1bf   : > { %951 = vmax.xlane.f32.xlu1 %v950_v10  ;;  %927 = vmax.xlane.f32.xlu0 %v926_v11  ;;  %v962_v22 = vsel %vm871_vm0, %v3400_v16, -inf }
 0x1c3   : > { %960 = vmax.xlane.f32.xlu1 %v959_v18  ;;  %936 = vmax.xlane.f32.xlu0 %v935_v19 }
 0x1c7   : > { %957 = vmax.xlane.f32.xlu1 %v956_v20  ;;  %933 = vmax.xlane.f32.xlu0 %v932_v21 }
 0x1cb   : > { %963 = vmax.xlane.f32.xlu1 %v962_v22  ;;  %939 = vmax.xlane.f32.xlu0 %v938_v24 }
 0x1cf   : > { %966 = vmax.xlane.f32.xlu1 %v965_v26  ;;  %942 = vmax.xlane.f32.xlu0 %v941_v27 }
 0x21f   : > { %v877_v29 = vpop.xlane.xlu1 %876 }
 0x220   : > { %v969_v31 = vsub.f32 %v3292_v12, %v877_v29  ;;  %v874_v32 = vpop.xlane.xlu0 %873 }
 0x221   : > { %v968_v33 = vsub.f32 %v3296_v28, %v874_v32 }
 0x222   : > { %v1002_v38 = vmul.f32 1.442695, %v969_v31 }
 0x223   : > { %v1000_v39 = vmul.f32 1.442695, %v968_v33  ;;  %v901_v44 = vpop.xlane.xlu1 %900 }
 0x224   : > { %2564 = vpow2.f32 %v1002_v38  ;;  %v977_v45 = vsub.f32 %v3294_v13, %v901_v44  ;;  %v898_v50 = vpop.xlane.xlu0 %897 }
 0x225   : > { %v976_v51 = vsub.f32 %v3300_v30, %v898_v50  ;;  %2566 = vpow2.f32 %v1000_v39 }
 0x226   : > { %v1018_v52 = vmul.f32 1.442695, %v977_v45 }
 0x227   : > { %v1016_v53 = vmul.f32 1.442695, %v976_v51  ;;  %v907_v54 = vpop.xlane.xlu1 %906 }
 0x228   : > { %2568 = vpow2.f32 %v1018_v52  ;;  %v979_v55 = vsub.f32 %v3308_v34, %v907_v54  ;;  %v883_v12 = vpop.xlane.xlu0 %882 }
 0x229   : > { %v971_v56 = vsub.f32 %v3310_v35, %v883_v12  ;;  %2570 = vpow2.f32 %v1016_v53 }
 0x22a   : > { %v1022_v28 = vmul.f32 1.442695, %v979_v55 }
 0x22b   : > { %v1006_v57 = vmul.f32 1.442695, %v971_v56  ;;  %v904_v60 = vpop.xlane.xlu1 %903  ;;  %v1224_v56 = vld [vmem:[%s3174_s1] sm:$0xff] }
 0x22c   : > { %v978_v61 = vsub.f32 %v3314_v37, %v904_v60  ;;  %v880_v13 = vpop.xlane.xlu0 %879 }
 0x22d   : > { %2572 = vpow2.f32 %v1006_v57  ;;  %v970_v30 = vsub.f32 %v3312_v36, %v880_v13 }
 0x22e   : > { %v3428_v62 = vpop.eup %2564  ;;  %2574 = vpow2.f32 %v1022_v28  ;;  %v1020_v63 = vmul.f32 1.442695, %v978_v61  ;;  %v1225_v28 = vld [vmem:[%s3174_s1 + $0x8] sm:$0xff] }
 0x22f   : > { %v1004_v2 = vmul.f32 1.442695, %v970_v30  ;;  %v913_v6 = vpop.xlane.xlu1 %912  ;;  %v1067_v34 = vsel %vm871_vm0, %v3428_v62, 0.0  ;;  %v3432_v35 = vpop.eup %2566  ;;  %v2429_v60 = vpack.c.bf16 %v1225_v28, %v1224_v56 }
 0x230   : > { %v981_v10 = vsub.f32 %v3320_v40, %v913_v6  ;;  %v889_v11 = vpop.xlane.xlu0 %888  ;;  %1068 = vadd.xlane.f32.xlu0 %v1067_v34  ;;  %v1064_v22 = vsel %vm871_vm0, %v3432_v35, 0.0 }
 0x231   : > { %2576 = vpow2.f32 %v1004_v2  ;;  %v973_v37 = vsub.f32 %v3322_v23, %v889_v11  ;;  %2430 = vmatprep.subr.bf16.mxu0 %v2429_v60  ;;  %v1226_v11 = vld [vmem:[%s3174_s1 + $0x10] sm:$0xff] }
 0x232   : > { %v3436_v18 = vpop.eup %2568  ;;  %2578 = vpow2.f32 %v1020_v63  ;;  %v1026_v36 = vmul.f32 1.442695, %v981_v10  ;;  %2432 = vmatpush3.bf16.msra.mxu0 %v2429_v60  ;;  %v1231_v60 = vld [vmem:[%s3174_s1 + $0x38] sm:$0xff] }
 0x233   : > { %v1010_v19 = vmul.f32 1.442695, %v973_v37  ;;  %v910_v20 = vpop.xlane.xlu1 %909  ;;  %v1091_v21 = vsel %vm871_vm0, %v3436_v18, 0.0  ;;  %v3442_v24 = vpop.eup %2570  ;;  %v1227_v37 = vld [vmem:[%s3174_s1 + $0x18] sm:$0xff] }
 0x234   : > { %v980_v40 = vsub.f32 %v3326_v25, %v910_v20  ;;  %1092 = vadd.xlane.f32.xlu1 %v1091_v21  ;;  %v886_v26 = vpop.xlane.xlu0 %885  ;;  %1065 = vadd.xlane.f32.xlu0 %v1064_v22  ;;  %v1088_v33 = vsel %vm871_vm0, %v3442_v24, 0.0  ;;  %v2433_v22 = vpack.c.bf16 %v1227_v37, %v1226_v11 }
 0x235   : > { %2580 = vpow2.f32 %v1010_v19  ;;  %v972_v23 = vsub.f32 %v3324_v41, %v886_v26 }
 0x236   : > { %2582 = vpow2.f32 %v1026_v36  ;;  %v1024_v27 = vmul.f32 1.442695, %v980_v40  ;;  %v1232_v36 = vld [vmem:[%s3174_s1 + $0x40] sm:$0xff]  ;;  %v1233_v40 = vld [vmem:[%s3174_s1 + $0x48] sm:$0xff]  ;;  %2434 = vmatprep.subr.bf16.mxu0 %v2433_v22 }
 0x237   : > { %v3446_v29 = vpop.eup %2572  ;;  %v1008_v31 = vmul.f32 1.442695, %v972_v23  ;;  %v919_v32 = vpop.xlane.xlu1 %918  ;;  %2436 = vmatpush3.bf16.msra.mxu0 %v2433_v22 }
 0x238   : > { %v3450_v38 = vpop.eup %2574  ;;  %v983_v39 = vsub.f32 %v3332_v46, %v919_v32  ;;  %1089 = vadd.xlane.f32.xlu1 %v1088_v33  ;;  %v895_v25 = vpop.xlane.xlu0 %894  ;;  %v1073_v44 = vsel %vm871_vm0, %v3446_v29, 0.0 }
 0x239   : > { %2584 = vpow2.f32 %v1008_v31  ;;  %v975_v41 = vsub.f32 %v3334_v47, %v895_v25  ;;  %1074 = vadd.xlane.f32.xlu0 %v1073_v44  ;;  %v1097_v46 = vsel %vm871_vm0, %v3450_v38, 0.0  ;;  %v2445_v31 = vpack.c.bf16 %v1233_v40, %v1232_v36  ;;  %v1229_v25 = vld [vmem:[%s3174_s1 + $0x28] sm:$0xff]  ;;  %v1234_v44 = vld [vmem:[%s3174_s1 + $0x50] sm:$0xff] }
 0x23a   : > { %2586 = vpow2.f32 %v1024_v27  ;;  %v1030_v45 = vmul.f32 1.442695, %v983_v39  ;;  %v1228_v39 = vld [vmem:[%s3174_s1 + $0x20] sm:$0xff] }
 0x23b   : > { %v3456_v50 = vpop.eup %2576  ;;  %v1014_v51 = vmul.f32 1.442695, %v975_v41  ;;  %v916_v52 = vpop.xlane.xlu1 %915  ;;  %2446 = vmatprep.subr.bf16.mxu1 %v2445_v31 }
 0x23c   : > { %v3460_v53 = vpop.eup %2578  ;;  %v982_v54 = vsub.f32 %v3338_v49, %v916_v52  ;;  %1098 = vadd.xlane.f32.xlu1 %v1097_v46  ;;  %v892_v55 = vpop.xlane.xlu0 %891  ;;  %v1070_v47 = vsel %vm871_vm0, %v3456_v50, 0.0  ;;  %2448 = vmatpush3.bf16.msra.mxu1 %v2445_v31  ;;  %v2437_v52 = vpack.c.bf16 %v1229_v25, %v1228_v39 }
 0x23d   : > { %2588 = vpow2.f32 %v1014_v51  ;;  %v974_v12 = vsub.f32 %v3336_v48, %v892_v55  ;;  %1071 = vadd.xlane.f32.xlu0 %v1070_v47  ;;  %v1094_v30 = vsel %vm871_vm0, %v3460_v53, 0.0 }
 0x23e   : > { %2590 = vpow2.f32 %v1030_v45  ;;  %v1028_v57 = vmul.f32 1.442695, %v982_v54  ;;  %2438 = vmatprep.subr.bf16.mxu0 %v2437_v52 }
 0x23f   : > { %v3468_v61 = vpop.eup %2580  ;;  %v1012_v13 = vmul.f32 1.442695, %v974_v12  ;;  %2440 = vmatpush3.bf16.msra.mxu0 %v2437_v52 }
 0x240   : > { %v949_v49 = vpop.xlane.xlu1 %948  ;;  %v3472_v63 = vpop.eup %2582  ;;  %1095 = vadd.xlane.f32.xlu1 %v1094_v30  ;;  %v1079_v6 = vsel %vm871_vm0, %v3468_v61, 0.0 }
 0x241   : > { %v993_v48 = vsub.f32 %v3356_v58, %v949_v49  ;;  %v925_v2 = vpop.xlane.xlu0 %924  ;;  %2592 = vpow2.f32 %v1012_v13  ;;  %1080 = vadd.xlane.f32.xlu0 %v1079_v6  ;;  %v1103_v21 = vsel %vm871_vm0, %v3472_v63, 0.0  ;;  %v1236_v13 = vld [vmem:[%s3174_s1 + $0x60] sm:$0xff] }
 0x242   : > { %v985_v34 = vsub.f32 %v3358_v59, %v925_v2  ;;  %2594 = vpow2.f32 %v1028_v57  ;;  %v1230_v57 = vld [vmem:[%s3174_s1 + $0x30] sm:$0xff] }
 0x243   : > { %v1050_v10 = vmul.f32 1.442695, %v993_v48  ;;  %v3481_v19 = vpop.eup %2584  ;;  %v2441_v2 = vpack.c.bf16 %v1231_v60, %v1230_v57 }
 0x244   : > { %v1034_v58 = vmul.f32 1.442695, %v985_v34  ;;  %v946_v20 = vpop.xlane.xlu1 %945  ;;  %v3486_v26 = vpop.eup %2586  ;;  %1104 = vadd.xlane.f32.xlu1 %v1103_v21  ;;  %v1076_v27 = vsel %vm871_vm0, %v3481_v19, 0.0  ;;  %v1239_v21 = vld [vmem:[%s3174_s1 + $0x78] sm:$0xff] }
 0x245   : > { %v992_v59 = vsub.f32 %v3366_v43, %v946_v20  ;;  %v922_v23 = vpop.xlane.xlu0 %921  ;;  %1077 = vadd.xlane.f32.xlu0 %v1076_v27  ;;  %v1100_v51 = vsel %vm871_vm0, %v3486_v26, 0.0  ;;  %2442 = vmatprep.subr.bf16.mxu0 %v2441_v2  ;;  %v1238_v20 = vld [vmem:[%s3174_s1 + $0x70] sm:$0xff] }
 0x246   : > { %2596 = vpow2.f32 %v1034_v58  ;;  %v984_v32 = vsub.f32 %v3364_v42, %v922_v23  ;;  %v1235_v42 = vld [vmem:[%s3174_s1 + $0x58] sm:$0xff]  ;;  %2444 = vmatpush3.bf16.msra.mxu0 %v2441_v2  ;;  %v2457_v23 = vpack.c.bf16 %v1239_v21, %v1238_v20  ;;  %v1241_v20 = vld [vmem:[%s3174_s1 + $0x88] sm:$0xff] }
 0x247   : > { %2598 = vpow2.f32 %v1050_v10  ;;  %v1048_v33 = vmul.f32 1.442695, %v992_v59  ;;  %v3495_v43 = vpop.eup %2588  ;;  %v2449_v12 = vpack.c.bf16 %v1235_v42, %v1234_v44 }
 0x248   : > { %v1032_v41 = vmul.f32 1.442695, %v984_v32  ;;  %v955_v45 = vpop.xlane.xlu1 %954  ;;  %v3500_v46 = vpop.eup %2590  ;;  %1101 = vadd.xlane.f32.xlu1 %v1100_v51  ;;  %v1085_v47 = vsel %vm871_vm0, %v3495_v43, 0.0 }
 0x249   : > { %v995_v54 = vsub.f32 %v3372_v0, %v955_v45  ;;  %v931_v55 = vpop.xlane.xlu0 %930  ;;  %1086 = vadd.xlane.f32.xlu0 %v1085_v47  ;;  %2450 = vmatprep.subr.bf16.mxu1 %v2449_v12  ;;  %v1109_v48 = vsel %vm871_vm0, %v3500_v46, 0.0 }
 0x24a   : > { %2600 = vpow2.f32 %v1032_v41  ;;  %v987_v56 = vsub.f32 %v3374_v1, %v931_v55  ;;  %2452 = vmatpush3.bf16.msra.mxu1 %v2449_v12  ;;  %v1237_v1 = vld [vmem:[%s3174_s1 + $0x68] sm:$0xff] }
 0x24b   : > { %2602 = vpow2.f32 %v1048_v33  ;;  %v1054_v28 = vmul.f32 1.442695, %v995_v54  ;;  %v3509_v0 = vpop.eup %2592  ;;  %v2453_v37 = vpack.c.bf16 %v1237_v1, %v1236_v13 }
 0x24c   : > { %v1038_v49 = vmul.f32 1.442695, %v987_v56  ;;  %v952_v30 = vpop.xlane.xlu1 %951  ;;  %v3514_v6 = vpop.eup %2594  ;;  %1110 = vadd.xlane.f32.xlu1 %v1109_v48  ;;  %v1082_v11 = vsel %vm871_vm0, %v3509_v0, 0.0 }
 0x24d   : > { %v994_v34 = vsub.f32 %v3378_v5, %v952_v30  ;;  %v928_v10 = vpop.xlane.xlu0 %927  ;;  %1083 = vadd.xlane.f32.xlu0 %v1082_v11  ;;  %2454 = vmatprep.subr.bf16.mxu1 %v2453_v37  ;;  %v1106_v59 = vsel %vm871_vm0, %v3514_v6, 0.0 }
 0x24e   : > { %2604 = vpow2.f32 %v1038_v49  ;;  %v986_v36 = vsub.f32 %v3376_v4, %v928_v10  ;;  %2456 = vmatpush3.bf16.msra.mxu1 %v2453_v37 }
 0x24f   : > { %2606 = vpow2.f32 %v1054_v28  ;;  %v1052_v58 = vmul.f32 1.442695, %v994_v34  ;;  %2458 = vmatprep.subr.bf16.mxu1 %v2457_v23 }
 0x250   : > { %v3522_v22 = vpop.eup %2596  ;;  %v1036_v5 = vmul.f32 1.442695, %v986_v36  ;;  %v961_v40 = vpop.xlane.xlu1 %960  ;;  %1107 = vadd.xlane.f32.xlu1 %v1106_v59  ;;  %v1249_v59 = vld [vmem:[%s3174_s1 + $0xc8] sm:$0xff] }
 0x251   : > { %v3526_v27 = vpop.eup %2598  ;;  %v997_v4 = vsub.f32 %v3384_v3, %v961_v40  ;;  %v937_v31 = vpop.xlane.xlu0 %936  ;;  %v1115_v32 = vsel %vm871_vm0, %v3522_v22, 0.0  ;;  %v1248_v40 = vld [vmem:[%s3174_s1 + $0xc0] sm:$0xff] }
 0x252   : > { %2608 = vpow2.f32 %v1036_v5  ;;  %v989_v33 = vsub.f32 %v3386_v7, %v937_v31  ;;  %1116 = vadd.xlane.f32.xlu0 %v1115_v32  ;;  %v1139_v45 = vsel %vm871_vm0, %v3526_v27, 0.0  ;;  %2460 = vmatpush3.bf16.msra.mxu1 %v2457_v23  ;;  %v3581_v31 = vpack.c.bf16 %v1249_v59, %v1248_v40  ;;  %v1245_v40 = vld [vmem:[%s3174_s1 + $0xa8] sm:$0xff] }
 0x253   : > { %2610 = vpow2.f32 %v1052_v58  ;;  %v1058_v39 = vmul.f32 1.442695, %v997_v4 }
 0x254   : > { %v3532_v25 = vpop.eup %2600  ;;  %v1042_v44 = vmul.f32 1.442695, %v989_v33  ;;  %v958_v41 = vpop.xlane.xlu1 %957  ;;  %1140 = vadd.xlane.f32.xlu1 %v1139_v45  ;;  %2478 = vmatprep.subr.bf16.mxu1 %v3581_v31 }
 0x255   : > { %v3536_v3 = vpop.eup %2602  ;;  %v996_v51 = vsub.f32 %v3390_v9, %v958_v41  ;;  %v934_v52 = vpop.xlane.xlu0 %933  ;;  %v1112_v7 = vsel %vm871_vm0, %v3532_v25, 0.0 }
 0x256   : > { %2612 = vpow2.f32 %v1042_v44  ;;  %v988_v42 = vsub.f32 %v3388_v8, %v934_v52  ;;  %1113 = vadd.xlane.f32.xlu0 %v1112_v7  ;;  %v1136_v56 = vsel %vm871_vm0, %v3536_v3, 0.0 }
 0x257   : > { %2614 = vpow2.f32 %v1058_v39  ;;  %v1056_v54 = vmul.f32 1.442695, %v996_v51 }
 0x258   : > { %v3542_v55 = vpop.eup %2604  ;;  %v1040_v47 = vmul.f32 1.442695, %v988_v42  ;;  %v964_v12 = vpop.xlane.xlu1 %963  ;;  %1137 = vadd.xlane.f32.xlu1 %v1136_v56 }
 0x259   : > { %v3546_v28 = vpop.eup %2606  ;;  %v998_v9 = vsub.f32 %v3400_v16, %v964_v12  ;;  %v940_v57 = vpop.xlane.xlu0 %939  ;;  %v1121_v60 = vsel %vm871_vm0, %v3542_v55, 0.0 }
 0x25a   : > { %2616 = vpow2.f32 %v1040_v47  ;;  %v990_v8 = vsub.f32 %v3402_v17, %v940_v57  ;;  %1122 = vadd.xlane.f32.xlu0 %v1121_v60  ;;  %v1145_v16 = vsel %vm871_vm0, %v3546_v28, 0.0 }
 0x25b   : > { %2618 = vpow2.f32 %v1056_v54  ;;  %v1060_v13 = vmul.f32 1.442695, %v998_v9 }
 0x25c   : > { %v3552_v49 = vpop.eup %2608  ;;  %v1044_v30 = vmul.f32 1.442695, %v990_v8  ;;  %v967_v48 = vpop.xlane.xlu1 %966  ;;  %1146 = vadd.xlane.f32.xlu1 %v1145_v16 }
 0x25d   : > { %v3556_v2 = vpop.eup %2610  ;;  %v999_v1 = vsub.f32 %v3396_v14, %v967_v48  ;;  %v943_v34 = vpop.xlane.xlu0 %942  ;;  %v1118_v17 = vsel %vm871_vm0, %v3552_v49, 0.0  ;;  %v1240_v14 = vld [vmem:[%s3174_s1 + $0x80] sm:$0xff]  ;;  %v1243_v48 = vld [vmem:[%s3174_s1 + $0x98] sm:$0xff] }
 0x25e   : > { %2620 = vpow2.f32 %v1044_v30  ;;  %v991_v10 = vsub.f32 %v3398_v15, %v943_v34  ;;  %1119 = vadd.xlane.f32.xlu0 %v1118_v17  ;;  %v1142_v58 = vsel %vm871_vm0, %v3556_v2, 0.0  ;;  %v3572_v15 = vpack.c.bf16 %v1241_v20, %v1240_v14  ;;  %v1242_v30 = vld [vmem:[%s3174_s1 + $0x90] sm:$0xff]  ;;  %v1251_v14 = vld [vmem:[%s3174_s1 + $0xd8] sm:$0xff] }
 0x25f   : > { %2622 = vpow2.f32 %v1060_v13  ;;  %v1062_v11 = vmul.f32 1.442695, %v999_v1 }
 0x260   : > { %v3562_v37 = vpop.eup %2612  ;;  %v1046_v36 = vmul.f32 1.442695, %v991_v10  ;;  %1143 = vadd.xlane.f32.xlu1 %v1142_v58  ;;  %2462 = vmatprep.subr.bf16.mxu0 %v3572_v15  ;;  %v1250_v58 = vld [vmem:[%s3174_s1 + $0xd0] sm:$0xff] }
 0x261   : > { %v3568_v21 = vpop.eup %2614  ;;  %v1127_v5 = vsel %vm871_vm0, %v3562_v37, 0.0 }
 0x262   : > { %2624 = vpow2.f32 %v1046_v36  ;;  %1128 = vadd.xlane.f32.xlu0 %v1127_v5  ;;  %v1151_v4 = vsel %vm871_vm0, %v3568_v21, 0.0  ;;  %v2465_v36 = vpack.c.bf16 %v1243_v48, %v1242_v30  ;;  %v1244_v5 = vld [vmem:[%s3174_s1 + $0xa0] sm:$0xff] }
 0x263   : > { %2626 = vpow2.f32 %v1062_v11 }
 0x264   : > { %v3577_v23 = vpop.eup %2616  ;;  %1152 = vadd.xlane.f32.xlu1 %v1151_v4 }
 0x265   : > { %v3583_v32 = vpop.eup %2618  ;;  %v1124_v33 = vsel %vm871_vm0, %v3577_v23, 0.0 }
 0x266   : > { %1125 = vadd.xlane.f32.xlu0 %v1124_v33  ;;  %v1148_v44 = vsel %vm871_vm0, %v3583_v32, 0.0  ;;  %v2481_v33 = vpack.c.bf16 %v1251_v14, %v1250_v58 }
 0x268   : > { %v3588_v39 = vpop.eup %2620  ;;  %1149 = vadd.xlane.f32.xlu1 %v1148_v44  ;;  %v2469_v44 = vpack.c.bf16 %v1245_v40, %v1244_v5 }
 0x269   : > { %v3592_v41 = vpop.eup %2622  ;;  %v1130_v45 = vsel %vm871_vm0, %v3588_v39, 0.0 }
 0x26a   : > { %1131 = vadd.xlane.f32.xlu0 %v1130_v45  ;;  %v1154_v52 = vsel %vm871_vm0, %v3592_v41, 0.0  ;;  %v1252_v45 = vld [vmem:[%s3174_s1 + $0xe0] sm:$0xff] }
 0x26c   : > { %v3596_v51 = vpop.eup %2624  ;;  %1155 = vadd.xlane.f32.xlu1 %v1154_v52  ;;  %v1253_v52 = vld [vmem:[%s3174_s1 + $0xe8] sm:$0xff] }
 0x26d   : > { %v3600_v7 = vpop.eup %2626  ;;  %v1133_v42 = vsel %vm871_vm0, %v3596_v51, 0.0 }
 0x26e   : > { %1134 = vadd.xlane.f32.xlu0 %v1133_v42  ;;  %v1157_v54 = vsel %vm871_vm0, %v3600_v7, 0.0 }
 0x270   : > { %1158 = vadd.xlane.f32.xlu1 %v1157_v54  ;;  %v1246_v54 = vld [vmem:[%s3174_s1 + $0xb0] sm:$0xff] }
 0x2bd   : > { %v1069_v47 = vpop.xlane.xlu0 %1068 }
 0x2be   : > { %2628 = vrcp.f32 %v1069_v47 }
 0x2c1   : > { %v1093_v12 = vpop.xlane.xlu1 %1092  ;;  %v1066_v56 = vpop.xlane.xlu0 %1065 }
 0x2c2   : > { %2630 = vrcp.f32 %v1066_v56  ;;  %v2485_v56 = vpack.c.bf16 %v1253_v52, %v1252_v45 }
 0x2c3   : > { %2632 = vrcp.f32 %v1093_v12 }
 0x2c5   : > { %v1090_v9 = vpop.xlane.xlu1 %1089 }
 0x2c6   : > { %2634 = vrcp.f32 %v1090_v9  ;;  %v1075_v57 = vpop.xlane.xlu0 %1074 }
 0x2c7   : > { %2636 = vrcp.f32 %v1075_v57 }
 0x2c8   : > { %v2629_v13 = vpop.eup %2628 }
 0x2c9   : > { %v1099_v60 = vpop.xlane.xlu1 %1098  ;;  %v1193_v11 = vmul.f32 %v2629_v13, %v3428_v62  ;;  %v1255_v13 = vld [vmem:[%s3174_s1 + $0xf8] sm:$0xff] }
 0x2ca   : > { %v1072_v8 = vpop.xlane.xlu0 %1071 }
 0x2cb   : > { %2638 = vrcp.f32 %v1072_v8  ;;  %v1254_v8 = vld [vmem:[%s3174_s1 + $0xf0] sm:$0xff] }
 0x2cc   : > { %v2631_v16 = vpop.eup %2630  ;;  %2640 = vrcp.f32 %v1099_v60 }
 0x2cd   : > { %v1096_v1 = vpop.xlane.xlu1 %1095  ;;  %v1192_v17 = vmul.f32 %v2631_v16, %v3432_v35  ;;  %v2633_v10 = vpop.eup %2632 }
 0x2ce   : > { %2642 = vrcp.f32 %v1096_v1  ;;  %v1081_v34 = vpop.xlane.xlu0 %1080  ;;  %v1201_v4 = vmul.f32 %v2633_v10, %v3436_v18 }
 0x2cf   : > { %2269 = vmatprep.mubr.msk.f32.mxu0 %vm871_vm0, %v1192_v17  ;;  %2644 = vrcp.f32 %v1081_v34 }
 0x2d0   : > { %v2635_v20 = vpop.eup %2634  ;;  %2270 = vmatmul.mubr.msk.f32.vlgmr.msra.gmra.mrb[16].mxu0 %vm871_vm0, %v1193_v11 }
 0x2d1   : > { %v1105_v59 = vpop.xlane.xlu1 %1104  ;;  %v1200_v35 = vmul.f32 %v2635_v20, %v3442_v24  ;;  %2464 = vmatpush3.bf16.msra.mxu0 %v3572_v15  ;;  %v2637_v42 = vpop.eup %2636  ;;  %v1247_v24 = vld [vmem:[%s3174_s1 + $0xb8] sm:$0xff] }
 0x2d2   : > { %v1078_v62 = vpop.xlane.xlu0 %1077  ;;  %2466 = vmatprep.subr.bf16.mxu0 %v2465_v36  ;;  %v1195_v57 = vmul.f32 %v2637_v42, %v3446_v29  ;;  %v2473_v60 = vpack.c.bf16 %v1247_v24, %v1246_v54  ;;  %v2489_v29 = vpack.c.bf16 %v1255_v13, %v1254_v8 }
 0x2d3   : > { %2646 = vrcp.f32 %v1078_v62  ;;  %2297 = vmatprep.mubr.msk.f32.mxu1 %vm871_vm0, %v1200_v35 }
 0x2d4   : > { %2298 = vmatmul.mubr.msk.f32.vlgmr.msra.gmra.mrb[16].mxu1 %vm871_vm0, %v1201_v4  ;;  %2648 = vrcp.f32 %v1105_v59 }
 0x2d5   : > { %v2639_v18 = vpop.eup %2638  ;;  %v1102_v47 = vpop.xlane.xlu1 %1101  ;;  %2480 = vmatpush3.bf16.msra.mxu1 %v3581_v31  ;;  %2468 = vmatpush3.bf16.msra.mxu0 %v2465_v36 }
 0x2d6   : > { %2650 = vrcp.f32 %v1102_v47  ;;  %v1087_v15 = vpop.xlane.xlu0 %1086  ;;  %v1194_v12 = vmul.f32 %v2639_v18, %v3456_v50  ;;  %2482 = vmatprep.subr.bf16.mxu1 %v2481_v33  ;;  %v2641_v9 = vpop.eup %2640  ;;  %2470 = vmatprep.subr.bf16.mxu0 %v2469_v44 }
 0x2d7   : > { %2652 = vrcp.f32 %v1087_v15  ;;  %v1203_v16 = vmul.f32 %v2641_v9, %v3450_v38 }
 0x2d8   : > { %v2643_v30 = vpop.eup %2642  ;;  %2272 = vmatprep.mubr.msk.f32.mxu0 %vm871_vm0, %v1194_v12 }
 0x2d9   : > { %v1111_v48 = vpop.xlane.xlu1 %1110  ;;  %2273 = vmatmul.mubr.msk.f32.gmra.mrb[18].mxu0 %vm871_vm0, %v1195_v57  ;;  %v1202_v31 = vmul.f32 %v2643_v30, %v3460_v53  ;;  %2484 = vmatpush3.bf16.msra.mxu1 %v2481_v33  ;;  %v2645_v1 = vpop.eup %2644 }
 0x2da   : > { %v1084_v50 = vpop.xlane.xlu0 %1083  ;;  %2472 = vmatpush3.bf16.msra.mxu0 %v2469_v44  ;;  %2486 = vmatprep.subr.bf16.mxu1 %v2485_v56  ;;  %v1197_v11 = vmul.f32 %v2645_v1, %v3468_v61 }
 0x2db   : > { %2654 = vrcp.f32 %v1084_v50  ;;  %2300 = vmatprep.mubr.msk.f32.mxu1 %vm871_vm0, %v1202_v31  ;;  %2474 = vmatprep.subr.bf16.mxu0 %v2473_v60 }
 0x2dc   : > { %2301 = vmatmul.mubr.msk.f32.gmra.mrb[18].mxu1 %vm871_vm0, %v1203_v16  ;;  %2656 = vrcp.f32 %v1111_v48 }
 0x2dd   : > { %v2647_v34 = vpop.eup %2646  ;;  %v1108_v17 = vpop.xlane.xlu1 %1107  ;;  %2488 = vmatpush3.bf16.msra.mxu1 %v2485_v56 }
 0x2de   : > { %2658 = vrcp.f32 %v1108_v17  ;;  %v1196_v10 = vmul.f32 %v2647_v34, %v3481_v19  ;;  %2476 = vmatpush3.bf16.msra.mxu0 %v2473_v60  ;;  %2490 = vmatprep.subr.bf16.mxu1 %v2489_v29  ;;  %v2649_v38 = vpop.eup %2648 }
 0x2df   : > { %v1117_v53 = vpop.xlane.xlu0 %1116  ;;  %v1205_v5 = vmul.f32 %v2649_v38, %v3472_v63 }
 0x2e0   : > { %v2651_v36 = vpop.eup %2650  ;;  %2275 = vmatprep.mubr.msk.f32.mxu0 %vm871_vm0, %v1196_v10  ;;  %2660 = vrcp.f32 %v1117_v53 }
 0x2e1   : > { %v1141_v58 = vpop.xlane.xlu1 %1140  ;;  %2276 = vmatmul.mubr.msk.f32.gmra.mrb[20].mxu0 %vm871_vm0, %v1197_v11  ;;  %v1204_v14 = vmul.f32 %v2651_v36, %v3486_v26  ;;  %2492 = vmatpush3.bf16.msra.mxu1 %v2489_v29  ;;  %v2653_v19 = vpop.eup %2652 }
 0x2e2   : > { %v1199_v26 = vmul.f32 %v2653_v19, %v3495_v43 }
 0x2e3   : > { %v1114_v20 = vpop.xlane.xlu0 %1113  ;;  %2303 = vmatprep.mubr.msk.f32.mxu1 %vm871_vm0, %v1204_v14 }
 0x2e4   : > { %2662 = vrcp.f32 %v1114_v20  ;;  %2304 = vmatmul.mubr.msk.f32.gmra.mrb[20].mxu1 %vm871_vm0, %v1205_v5 }
 0x2e5   : > { %v2655_v61 = vpop.eup %2654  ;;  %2664 = vrcp.f32 %v1141_v58  ;;  %v1138_v40 = vpop.xlane.xlu1 %1137 }
 0x2e6   : > { %2666 = vrcp.f32 %v1138_v40  ;;  %v1198_v35 = vmul.f32 %v2655_v61, %v3509_v0  ;;  %v2657_v4 = vpop.eup %2656 }
 0x2e7   : > { %v1123_v59 = vpop.xlane.xlu0 %1122  ;;  %v1207_v45 = vmul.f32 %v2657_v4, %v3500_v46 }
 0x2e8   : > { %v2659_v62 = vpop.eup %2658  ;;  %2278 = vmatprep.mubr.msk.f32.mxu0 %vm871_vm0, %v1198_v35  ;;  %2668 = vrcp.f32 %v1123_v59 }
 0x2e9   : > { %v1147_v63 = vpop.xlane.xlu1 %1146  ;;  %2279 = vmatmul.mubr.msk.f32.gmra.mrb[22].mxu0 %vm871_vm0, %v1199_v26  ;;  %v1206_v33 = vmul.f32 %v2659_v62, %v3514_v6 }
 0x2ea   : > { %v2661_v52 = vpop.eup %2660 }
 0x2eb   : > { %v1120_v44 = vpop.xlane.xlu0 %1119  ;;  %2306 = vmatprep.mubr.msk.f32.mxu1 %vm871_vm0, %v1206_v33  ;;  %v1209_v6 = vmul.f32 %v2661_v52, %v3522_v22 }
 0x2ec   : > { %2670 = vrcp.f32 %v1120_v44  ;;  %2307 = vmatmul.mubr.msk.f32.gmra.mrb[22].mxu1 %vm871_vm0, %v1207_v45 }
 0x2ed   : > { %2672 = vrcp.f32 %v1147_v63  ;;  %v1144_v43 = vpop.xlane.xlu1 %1143 }
 0x2ee   : > { %v2663_v0 = vpop.eup %2662  ;;  %2674 = vrcp.f32 %v1144_v43 }
 0x2ef   : > { %v1129_v42 = vpop.xlane.xlu0 %1128  ;;  %v1208_v54 = vmul.f32 %v2663_v0, %v3532_v25  ;;  %v2665_v24 = vpop.eup %2664 }
 0x2f0   : > { %v2667_v18 = vpop.eup %2666  ;;  %v1217_v15 = vmul.f32 %v2665_v24, %v3526_v27  ;;  %2676 = vrcp.f32 %v1129_v42 }
 0x2f1   : > { %2325 = vmatprep.mubr.msk.f32.mxu0 %vm871_vm0, %v1208_v54  ;;  %v1153_v46 = vpop.xlane.xlu1 %1152  ;;  %v1216_v47 = vmul.f32 %v2667_v18, %v3536_v3 }
 0x2f2   : > { %2326 = vmatmul.mubr.msk.f32.vlgmr.msra.gmra.mrb[24].mxu0 %vm871_vm0, %v1209_v6  ;;  %v2669_v56 = vpop.eup %2668 }
 0x2f3   : > { %v1126_v12 = vpop.xlane.xlu0 %1125  ;;  %2353 = vmatprep.mubr.msk.f32.mxu1 %vm871_vm0, %v1216_v47  ;;  %v1211_v3 = vmul.f32 %v2669_v56, %v3542_v55 }
 0x2f4   : > { %2678 = vrcp.f32 %v1126_v12  ;;  %2354 = vmatmul.mubr.msk.f32.vlgmr.msra.gmra.mrb[24].mxu1 %vm871_vm0, %v1217_v15 }
 0x2f5   : > { %2680 = vrcp.f32 %v1153_v46  ;;  %v1150_v22 = vpop.xlane.xlu1 %1149 }
 0x2f6   : > { %v2671_v25 = vpop.eup %2670  ;;  %2682 = vrcp.f32 %v1150_v22 }
 0x2f7   : > { %v1132_v9 = vpop.xlane.xlu0 %1131  ;;  %v1210_v57 = vmul.f32 %v2671_v25, %v3552_v49  ;;  %v2673_v60 = vpop.eup %2672 }
 0x2f8   : > { %2684 = vrcp.f32 %v1132_v9  ;;  %v2675_v27 = vpop.eup %2674  ;;  %v1219_v48 = vmul.f32 %v2673_v60, %v3546_v28 }
 0x2f9   : > { %2328 = vmatprep.mubr.msk.f32.mxu0 %vm871_vm0, %v1210_v57  ;;  %v1156_v8 = vpop.xlane.xlu1 %1155  ;;  %v1218_v13 = vmul.f32 %v2675_v27, %v3556_v2 }
 0x2fa   : > { %2329 = vmatmul.mubr.msk.f32.gmra.mrb[26].mxu0 %vm871_vm0, %v1211_v3  ;;  %2686 = vrcp.f32 %v1156_v8  ;;  %v2677_v49 = vpop.eup %2676 }
 0x2fb   : > { %v1135_v30 = vpop.xlane.xlu0 %1134  ;;  %2356 = vmatprep.mubr.msk.f32.mxu1 %vm871_vm0, %v1218_v13  ;;  %v1213_v29 = vmul.f32 %v2677_v49, %v3562_v37 }
 0x2fc   : > { %2688 = vrcp.f32 %v1135_v30  ;;  %2357 = vmatmul.mubr.msk.f32.gmra.mrb[26].mxu1 %vm871_vm0, %v1219_v48 }
 0x2fd   : > { %v1159_v55 = vpop.xlane.xlu1 %1158 }
 0x2fe   : > { %v2679_v31 = vpop.eup %2678  ;;  %2690 = vrcp.f32 %v1159_v55 }
 0x2ff   : > { %v1212_v50 = vmul.f32 %v2679_v31, %v3577_v23  ;;  %v2681_v16 = vpop.eup %2680 }
 0x300   : > { %v2683_v1 = vpop.eup %2682  ;;  %v1221_v17 = vmul.f32 %v2681_v16, %v3568_v21 }
 0x301   : > { %2331 = vmatprep.mubr.msk.f32.mxu0 %vm871_vm0, %v1212_v50  ;;  %v1220_v28 = vmul.f32 %v2683_v1, %v3583_v32 }
 0x302   : > { %v2685_v2 = vpop.eup %2684  ;;  %2332 = vmatmul.mubr.msk.f32.gmra.mrb[28].mxu0 %vm871_vm0, %v1213_v29 }
 0x303   : > { %v1214_v34 = vmul.f32 %v2685_v2, %v3588_v39  ;;  %2359 = vmatprep.mubr.msk.f32.mxu1 %vm871_vm0, %v1220_v28 }
 0x304   : > { %v2687_v53 = vpop.eup %2686  ;;  %2360 = vmatmul.mubr.msk.f32.gmra.mrb[28].mxu1 %vm871_vm0, %v1221_v17 }
 0x305   : > { %2334 = vmatprep.mubr.msk.f32.mxu0 %vm871_vm0, %v1214_v34  ;;  %v1222_v23 = vmul.f32 %v2687_v53, %v3592_v41 }
 0x306   : > { %v2689_v37 = vpop.eup %2688 }
 0x307   : > { %v1215_v10 = vmul.f32 %v2689_v37, %v3596_v51  ;;  %2362 = vmatprep.mubr.msk.f32.mxu1 %vm871_vm0, %v1222_v23 }
 0x308   : > { %v2691_v32 = vpop.eup %2690 }
 0x309   : > { %2335 = vmatmul.mubr.msk.f32.gmra.mrb[30].mxu0 %vm871_vm0, %v1215_v10  ;;  %v1223_v39 = vmul.f32 %v2691_v32, %v3600_v7 }
 0x30b   : > { %2363 = vmatmul.mubr.msk.f32.gmra.mrb[30].mxu1 %vm871_vm0, %v1223_v39 }
 0x3a3   : > { %v2271_v21 = vpop.f32.mrb[16].mxu0 }
 0x3a4   : > { %1773 = vst [vmem:[%s3685_s11 + $0x8] sm:$0xff] %v2271_v21  ;;  %v1346_v41 = vpop.f32.mrb[17].mxu0 }
 0x3a5   : > { %1772 = vst [vmem:[%s3685_s11] sm:$0xff] %v1346_v41 }
 0x3a7   : > { %v2299_v51 = vpop.f32.mrb[16].mxu1 }
 0x3a8   : > { %1781 = vst [vmem:[%s3685_s11 + $0x48] sm:$0xff] %v2299_v51  ;;  %v1475_v7 = vpop.f32.mrb[17].mxu1 }
 0x3a9   : > { %1780 = vst [vmem:[%s3685_s11 + $0x40] sm:$0xff] %v1475_v7 }
 0x3ac   : > { %v2274_v38 = vpop.f32.mrb[18].mxu0 }
 0x3ad   : > { %1775 = vst [vmem:[%s3685_s11 + $0x18] sm:$0xff] %v2274_v38  ;;  %v1356_v11 = vpop.f32.mrb[19].mxu0 }
 0x3ae   : > { %1774 = vst [vmem:[%s3685_s11 + $0x10] sm:$0xff] %v1356_v11 }
 0x3af   : > { %v2302_v36 = vpop.f32.mrb[18].mxu1 }
 0x3b0   : > { %1783 = vst [vmem:[%s3685_s11 + $0x58] sm:$0xff] %v2302_v36  ;;  %v1485_v58 = vpop.f32.mrb[19].mxu1 }
 0x3b1   : > { %1782 = vst [vmem:[%s3685_s11 + $0x50] sm:$0xff] %v1485_v58 }
 0x3b4   : > { %v2277_v14 = vpop.f32.mrb[20].mxu0 }
 0x3b5   : > { %1777 = vst [vmem:[%s3685_s11 + $0x28] sm:$0xff] %v2277_v14  ;;  %v1366_v20 = vpop.f32.mrb[21].mxu0 }
 0x3b6   : > { %1776 = vst [vmem:[%s3685_s11 + $0x20] sm:$0xff] %v1366_v20 }
 0x3b7   : > { %v2305_v5 = vpop.f32.mrb[20].mxu1 }
 0x3b8   : > { %1785 = vst [vmem:[%s3685_s11 + $0x68] sm:$0xff] %v2305_v5  ;;  %v1495_v19 = vpop.f32.mrb[21].mxu1 }
 0x3b9   : > { %1784 = vst [vmem:[%s3685_s11 + $0x60] sm:$0xff] %v1495_v19 }
 0x3bc   : > { %v2280_v61 = vpop.f32.mrb[22].mxu0 }
 0x3bd   : > { %1779 = vst [vmem:[%s3685_s11 + $0x38] sm:$0xff] %v2280_v61  ;;  %v1376_v40 = vpop.f32.mrb[23].mxu0 }
 0x3be   : > { %1778 = vst [vmem:[%s3685_s11 + $0x30] sm:$0xff] %v1376_v40 }
 0x3bf   : > { %v2308_v59 = vpop.f32.mrb[22].mxu1 }
 0x3c0   : > { %1787 = vst [vmem:[%s3685_s11 + $0x78] sm:$0xff] %v2308_v59  ;;  %v1505_v35 = vpop.f32.mrb[23].mxu1 }
 0x3c1   : > { %1786 = vst [vmem:[%s3685_s11 + $0x70] sm:$0xff] %v1505_v35 }
 0x3c5   : > { %v2327_v4 = vpop.f32.mrb[24].mxu0 }
 0x3c6   : > { %1789 = vst [vmem:[%s3685_s11 + $0x88] sm:$0xff] %v2327_v4  ;;  %v1604_v26 = vpop.f32.mrb[25].mxu0 }
 0x3c7   : > { %1788 = vst [vmem:[%s3685_s11 + $0x80] sm:$0xff] %v1604_v26  ;;  %v2355_v62 = vpop.f32.mrb[24].mxu1 }
 0x3c8   : > { %1797 = vst [vmem:[%s3685_s11 + $0xc8] sm:$0xff] %v2355_v62  ;;  %v1733_v63 = vpop.f32.mrb[25].mxu1 }
 0x3c9   : > { %1796 = vst [vmem:[%s3685_s11 + $0xc0] sm:$0xff] %v1733_v63 }
 0x3cd   : > { %v2330_v33 = vpop.f32.mrb[26].mxu0 }
 0x3ce   : > { %1791 = vst [vmem:[%s3685_s11 + $0x98] sm:$0xff] %v2330_v33  ;;  %v1614_v44 = vpop.f32.mrb[27].mxu0 }
 0x3cf   : > { %1790 = vst [vmem:[%s3685_s11 + $0x90] sm:$0xff] %v1614_v44  ;;  %v2358_v45 = vpop.f32.mrb[26].mxu1 }
 0x3d0   : > { %1799 = vst [vmem:[%s3685_s11 + $0xd8] sm:$0xff] %v2358_v45  ;;  %v1743_v52 = vpop.f32.mrb[27].mxu1 }
 0x3d1   : > { %1798 = vst [vmem:[%s3685_s11 + $0xd0] sm:$0xff] %v1743_v52 }
 0x3d5   : > { %v2333_v0 = vpop.f32.mrb[28].mxu0 }
 0x3d6   : > { %1793 = vst [vmem:[%s3685_s11 + $0xa8] sm:$0xff] %v2333_v0  ;;  %v1624_v43 = vpop.f32.mrb[29].mxu0 }
 0x3d7   : > { %1792 = vst [vmem:[%s3685_s11 + $0xa0] sm:$0xff] %v1624_v43  ;;  %v2361_v42 = vpop.f32.mrb[28].mxu1 }
 0x3d8   : > { %1801 = vst [vmem:[%s3685_s11 + $0xe8] sm:$0xff] %v2361_v42  ;;  %v1753_v54 = vpop.f32.mrb[29].mxu1 }
 0x3d9   : > { %1800 = vst [vmem:[%s3685_s11 + $0xe0] sm:$0xff] %v1753_v54 }
 0x3dc   : > { %v2336_v24 = vpop.f32.mrb[30].mxu0 }
 0x3dd   : > { %1795 = vst [vmem:[%s3685_s11 + $0xb8] sm:$0xff] %v2336_v24  ;;  %v1634_v6 = vpop.f32.mrb[31].mxu0 }
 0x3de   : > { %1794 = vst [vmem:[%s3685_s11 + $0xb0] sm:$0xff] %v1634_v6  ;;  %v2364_v18 = vpop.f32.mrb[30].mxu1 }
 0x3df   : > { %1803 = vst [vmem:[%s3685_s11 + $0xf8] sm:$0xff] %v2364_v18  ;;  %v1763_v46 = vpop.f32.mrb[31].mxu1 }
 0x3e0   : > { %1802 = vst [vmem:[%s3685_s11 + $0xf0] sm:$0xff] %v1763_v46 }
 0x3e1   : > { %2823 = shalt.err (!%p2820_p4)
}
 0x3e2   : > { %s2824_s28 = scalar_lea.hbm %s3722_s6, 4096  ;;  %s2828_s14 = scalar_lea.hbm %s3774_s4, 8192 }
 0x3e3   : > { %p2825_p7 = scmp.ne.s32.totalorder %s3722_s6, %s2824_s28  ;;  %p2829_p11 = scmp.lt.u32.totalorder %s3722_s6, %s3774_s4 }
 0x3e4   : > { %p2830_p0 = scmp.lt.u32.totalorder %s2828_s14, %s2824_s28  ;;  %p2832_p2 = scmp.lt.u32.totalorder %s2824_s28, %s3722_s6 }
 0x3e5   : > { %p2826_p5 = pnand %p2825_p7, %p3819_p12 }
 0x3e6   : > { %p2831_p1 = por %p2830_p0, %p2829_p11 }
 0x3e7   : > { %p2827_p8 = pneg %p2826_p5 }
 0x3e8   : > { %p2833_p10 = por %p2832_p2, %p2831_p1 }
 0x3ea   : > { %p2834_p13 = pnand %p2833_p10, %p2827_p8 }
 0x3ec   : > { %2837 = shalt.err (!%p2834_p13)
}
 0x3ed   : > { %s2893_s22 = smov 128   ;;  %s2894_s26 = smov 8  }
 0x3ee   : > { %2503 = dma.vmem_to_hbm [thread:$0]  (%p3819_p12), %s3724_s17, 4096, %s3722_s6, %s1805_s8, %s2893_s22, %s2893_s22, %s2894_s26  }
 0x3ef PF: > { %s3820_s25 = sld [smem:[#allocation19_spill]]  ;;  %s3821_s0 = sld [smem:[#allocation16_spill]] }
 0x3f0   : > { %s1834_s7 = sand.u32 1, %s2872_s15  }
 0x3f1   : > { %s1835_s12 = scalar_lea.sflag [#allocation4], %s1834_s7 }
 0x3f5   : > { %p3822_p3 = scmp.ne.s32.totalorder %s3820_s25, 0  ;;  %p3823_p9 = scmp.ge.s32.totalorder %s3821_s0, 2 }
 0x3f7   : > { %p2520_p6 = pnand %p3823_p9, %p3822_p3 }
 0x3f9   : > { %2867 = dma.done.wait (!%p2520_p6), %s1835_s12, 4096  }
 0x3fa   : > { %2869 = vsyncadd (!%p2520_p6), %s1835_s12, 4294963200  ;;  %s3824_s18 = sld [smem:[#allocation17_spill]]  ;;  %s3825_s1 = sld [smem:[#allocation15_spill]] }
 0x3fb   : > { %s3826_s17 = sld [smem:[#allocation18_spill]]  ;;  %s3827_s15 = smov %s2876_s16 }
 0x400   : > { %p21_p4 = scmp.ge.s32.totalorder %s3824_s18, 4   ;;  %s3828_s16 = smov %s3825_s1 }
 0x402   :  { %23 = sbr.rel (!%p21_p4) target bundleno = 11 (0xb), region = 109 }
 0x409   :  { %1840 = vsyncpa [#allocation3], 1 }
 0x40a   :  { %1842 = vsyncpa [#allocation3 + $0x1], 1 }
 0x40b   :  { %1843 = vsyncpa [#allocation6], 1 }
 0x40c   :  { %1845 = vsyncpa [#allocation6 + $0x1], 1 }
 0x40d   :  { %1846 = vsyncpa [#allocation9], 1 }
 0x40e   :  { %1847 = vsyncpa [#allocation4], 1 }
 0x40f   :  { %1849 = vsyncpa [#allocation4 + $0x1], 1 }

</bundles_post_ra>
